<compile_context>
chip_gen: v5e
topology: v5e:2x2
jax: 0.10.0
libtpu: 0.0.40
codegen_flags: <defaults>
</compile_context>

<pallas_src>
import functools
import math

import jax
import jax.numpy as jnp
from jax.experimental import pallas as pl
from jax.experimental.pallas import tpu as pltpu


# ----------------------------------------------------------------------------
# Fused feed-forward kernel
# ----------------------------------------------------------------------------

def _ffn_fused_kernel(x_ref, w1_ref, b1_ref, w2_ref, b2_ref, o_ref, acc_ref):
    """Grid step (i, f):
         h   = relu(x[i] @ W1[:, f] + b1[f])        (tm, tf)   VMEM-only
         acc += h @ W2[f, :]                        (tm, D)    f32 accumulator
         f == last:  o[i] = acc + b2
    """
    f = pl.program_id(1)

    @pl.when(f == 0)
    def _init():
        acc_ref[...] = jnp.zeros_like(acc_ref)

    # First matmul tile + bias + ReLU (epilogue on the f32 accumulator).
    h = jnp.dot(x_ref[...], w1_ref[...], preferred_element_type=jnp.float32)
    h = jnp.maximum(h + b1_ref[...], 0.0)

    # Second matmul: contract the hidden tile into the output accumulator.
    acc_ref[...] += jnp.dot(h.astype(w2_ref.dtype), w2_ref[...],
                            preferred_element_type=jnp.float32)

    @pl.when(f == pl.num_programs(1) - 1)
    def _finalize():
        o_ref[...] = (acc_ref[...] + b2_ref[...]).astype(o_ref.dtype)


def _round_up(x, m):
    return ((x + m - 1) // m) * m


def _pad2d(a, rows, cols, dtype):
    a = a.astype(dtype)
    if a.shape == (rows, cols):
        return a
    return jnp.zeros((rows, cols), dtype).at[: a.shape[0], : a.shape[1]].set(a)


def feed_forward(x, w1, b1, w2, b2, *, compute_dtype=jnp.float32):
    """relu(x @ w1 + b1) @ w2 + b2 for x of shape (..., d_model)."""
    orig_shape = x.shape
    d_model = orig_shape[-1]
    d_ff = w1.shape[1]
    x2d = x.reshape(-1, d_model)
    M = x2d.shape[0]

    # ---- tile sizes & lane-dense padding (last dims -> multiples of 128) ---
    Dp = _round_up(d_model, 128)                    # output / K lane width
    tm = min(256, _round_up(M, 8))                  # row tile (sublane axis)
    Mp = _round_up(M, tm)
    if d_ff <= 512:
        tf = _round_up(d_ff, 128)                   # single hidden tile
        Fp = tf
    else:
        tf = 512
        Fp = _round_up(d_ff, tf)

    cd = compute_dtype
    xp = _pad2d(x2d, Mp, Dp, cd)
    w1p = _pad2d(w1, Dp, Fp, cd)
    b1p = _pad2d(b1.reshape(1, d_ff), 1, Fp, jnp.float32)
    w2p = _pad2d(w2, Fp, Dp, cd)
    b2p = _pad2d(b2.reshape(1, d_model), 1, Dp, jnp.float32)

    grid = (Mp // tm, Fp // tf)

    out = pl.pallas_call(
        _ffn_fused_kernel,
        out_shape=jax.ShapeDtypeStruct((Mp, Dp), jnp.float32),
        grid_spec=pltpu.PrefetchScalarGridSpec(
            num_scalar_prefetch=0,
            grid=grid,
            in_specs=[
                pl.BlockSpec((tm, Dp), lambda i, f: (i, 0)),   # x row tile
                pl.BlockSpec((Dp, tf), lambda i, f: (0, f)),   # W1 column tile
                pl.BlockSpec((1, tf), lambda i, f: (0, f)),    # b1 tile
                pl.BlockSpec((tf, Dp), lambda i, f: (f, 0)),   # W2 row tile
                pl.BlockSpec((1, Dp), lambda i, f: (0, 0)),    # b2 (full)
            ],
            out_specs=pl.BlockSpec((tm, Dp), lambda i, f: (i, 0)),
            scratch_shapes=[pltpu.VMEM((tm, Dp), jnp.float32)],
        ),
        compiler_params=pltpu.CompilerParams(
            dimension_semantics=("parallel", "arbitrary")),
    )(xp, w1p, b1p, w2p, b2p)

    return out[:M, :d_model].reshape(orig_shape)


# ----------------------------------------------------------------------------
# Parameter construction (xavier-normal like the reference)
# ----------------------------------------------------------------------------

def xavier_normal(key, n_in, n_out):
    std = math.sqrt(2.0 / (n_in + n_out))
    return jax.random.normal(key, (n_in, n_out), jnp.float32) * std


# ----------------------------------------------------------------------------
# Demo
# ----------------------------------------------------------------------------

if __name__ == "__main__":
    d_model = 256       # lane-dense (multiple of 128)
    d_ff = 1024         # -> two hidden tiles of 512 (exercises the reduction)
    batch, seq = 2, 64  # M = 128 rows

    root = jax.random.PRNGKey(0)
    kx, k1, kb1, k2, kb2 = jax.random.split(root, 5)

    x = jax.random.normal(kx, (batch, seq, d_model), jnp.float32)
    W_1 = xavier_normal(k1, d_model, d_ff)
    b_1 = 0.1 * jax.random.normal(kb1, (d_ff,), jnp.float32)
    W_2 = xavier_normal(k2, d_ff, d_model)
    b_2 = 0.1 * jax.random.normal(kb2, (d_model,), jnp.float32)

    fwd = jax.jit(feed_forward)
    out = jax.block_until_ready(fwd(x, W_1, b_1, W_2, b_2))

    # Pure-JAX reference for correctness.
    ref = jnp.maximum(jnp.einsum("bsd,df->bsf", x, W_1) + b_1, 0.0)
    ref = jnp.einsum("bsf,fd->bsd", ref, W_2) + b_2

    assert out.shape == x.shape
    assert bool(jnp.all(jnp.isfinite(out)))
    assert bool(jnp.allclose(out, ref, atol=1e-2, rtol=1e-2))
    print("KERNEL_OK")
</pallas_src>

<mosaic_0001>
module attributes {stable_mosaic.version = 11 : i64} {
  func.func @_ffn_fused_kernel(%arg0: i32, %arg1: i32, %arg2: memref<128x256xf32, #tpu.memory_space<vmem>>, %arg3: memref<256x512xf32, #tpu.memory_space<vmem>>, %arg4: memref<1x512xf32, #tpu.memory_space<vmem>>, %arg5: memref<512x256xf32, #tpu.memory_space<vmem>>, %arg6: memref<1x256xf32, #tpu.memory_space<vmem>>, %arg7: memref<128x256xf32, #tpu.memory_space<vmem>>, %arg8: memref<128x256xf32, #tpu.memory_space<vmem>>) attributes {dimension_semantics = [#tpu.dimension_semantics<parallel>, #tpu.dimension_semantics<arbitrary>], iteration_bounds = array<i64: 1, 2>, scalar_prefetch = 0 : i64, scratch_operands = 1 : i64, tpu.core_type = #tpu.core_type<tc>, window_params = [{transform_indices = @transform_0, window_bounds = array<i64: 128, 256>}, {transform_indices = @transform_1, window_bounds = array<i64: 256, 512>}, {transform_indices = @transform_2, window_bounds = array<i64: 1, 512>}, {transform_indices = @transform_3, window_bounds = array<i64: 512, 256>}, {pipeline_mode = #tpu.pipeline_mode<synchronous>, transform_indices = @transform_4, window_bounds = array<i64: 1, 256>}, {transform_indices = @transform_5, window_bounds = array<i64: 128, 256>}]} {
    %c0_i32 = arith.constant 0 : i32
    %0 = arith.cmpi eq, %arg1, %c0_i32 : i32
    %1 = arith.extui %0 : i1 to i32
    %c0_i32_0 = arith.constant 0 : i32
    %2 = arith.cmpi ne, %1, %c0_i32_0 : i32
    scf.if %2 {
      %cst_15 = arith.constant 0.000000e+00 : f32
      %19 = vector.broadcast %cst_15 : f32 to vector<128x256xf32>
      %c0_16 = arith.constant 0 : index
      %c0_17 = arith.constant 0 : index
      %20 = vector.load %arg8[%c0_16, %c0_17] : memref<128x256xf32, #tpu.memory_space<vmem>>, vector<128x256xf32>
      tpu.vector_store %arg8[%c0_16, %c0_17], %19 {strides = array<i32>} : memref<128x256xf32, #tpu.memory_space<vmem>>, vector<128x256xf32>,
    } else {
    }
    %c0 = arith.constant 0 : index
    %c0_1 = arith.constant 0 : index
    %3 = vector.load %arg2[%c0, %c0_1] : memref<128x256xf32, #tpu.memory_space<vmem>>, vector<128x256xf32>
    %c0_2 = arith.constant 0 : index
    %c0_3 = arith.constant 0 : index
    %4 = vector.load %arg3[%c0_2, %c0_3] : memref<256x512xf32, #tpu.memory_space<vmem>>, vector<256x512xf32>
    %cst = arith.constant dense<0.000000e+00> : vector<128x512xf32>
    %5 = tpu.matmul %3, %4, %cst {dimension_numbers = #tpu.dot_dimension_numbers<[1], [0], [0], [1], [0, 0, 1, 1], [], []>} : vector<128x256xf32>, vector<256x512xf32>, vector<128x512xf32> -> vector<128x512xf32>
    %c0_4 = arith.constant 0 : index
    %c0_5 = arith.constant 0 : index
    %6 = vector.load %arg4[%c0_4, %c0_5] : memref<1x512xf32, #tpu.memory_space<vmem>>, vector<1x512xf32>
    %7 = vector.broadcast %6 : vector<1x512xf32> to vector<128x512xf32>
    %8 = arith.addf %5, %7 : vector<128x512xf32>
    %cst_6 = arith.constant 0.000000e+00 : f32
    %9 = vector.broadcast %cst_6 : f32 to vector<128x512xf32>
    %10 = arith.maximumf %8, %9 : vector<128x512xf32>
    %c0_7 = arith.constant 0 : index
    %c0_8 = arith.constant 0 : index
    %11 = vector.load %arg8[%c0_7, %c0_8] : memref<128x256xf32, #tpu.memory_space<vmem>>, vector<128x256xf32>
    %c0_9 = arith.constant 0 : index
    %c0_10 = arith.constant 0 : index
    %12 = vector.load %arg5[%c0_9, %c0_10] : memref<512x256xf32, #tpu.memory_space<vmem>>, vector<512x256xf32>
    %cst_11 = arith.constant dense<0.000000e+00> : vector<128x256xf32>
    %13 = tpu.matmul %10, %12, %cst_11 {dimension_numbers = #tpu.dot_dimension_numbers<[1], [0], [0], [1], [0, 0, 1, 1], [], []>} : vector<128x512xf32>, vector<512x256xf32>, vector<128x256xf32> -> vector<128x256xf32>
    %14 = arith.addf %11, %13 : vector<128x256xf32>
    %c0_12 = arith.constant 0 : index
    %c0_13 = arith.constant 0 : index
    %15 = vector.load %arg8[%c0_12, %c0_13] : memref<128x256xf32, #tpu.memory_space<vmem>>, vector<128x256xf32>
    tpu.vector_store %arg8[%c0_12, %c0_13], %14 {strides = array<i32>} : memref<128x256xf32, #tpu.memory_space<vmem>>, vector<128x256xf32>,
    %c1_i32 = arith.constant 1 : i32
    %16 = arith.cmpi eq, %arg1, %c1_i32 : i32
    %17 = arith.extui %16 : i1 to i32
    %c0_i32_14 = arith.constant 0 : i32
    %18 = arith.cmpi ne, %17, %c0_i32_14 : i32
    scf.if %18 {
      %c0_15 = arith.constant 0 : index
      %c0_16 = arith.constant 0 : index
      %19 = vector.load %arg8[%c0_15, %c0_16] : memref<128x256xf32, #tpu.memory_space<vmem>>, vector<128x256xf32>
      %c0_17 = arith.constant 0 : index
      %c0_18 = arith.constant 0 : index
      %20 = vector.load %arg6[%c0_17, %c0_18] : memref<1x256xf32, #tpu.memory_space<vmem>>, vector<1x256xf32>
      %21 = vector.broadcast %20 : vector<1x256xf32> to vector<128x256xf32>
      %22 = arith.addf %19, %21 : vector<128x256xf32>
      %c0_19 = arith.constant 0 : index
      %c0_20 = arith.constant 0 : index
      %23 = vector.load %arg7[%c0_19, %c0_20] : memref<128x256xf32, #tpu.memory_space<vmem>>, vector<128x256xf32>
      tpu.vector_store %arg7[%c0_19, %c0_20], %22 {strides = array<i32>} : memref<128x256xf32, #tpu.memory_space<vmem>>, vector<128x256xf32>,
    } else {
    }
    return
  }
  func.func @transform_0(%arg0: i32, %arg1: i32) -> (i32, i32) {
    %c0_i32 = arith.constant 0 : i32
    %c0_i32_0 = arith.constant 0 : i32
    return %arg0, %c0_i32 : i32, i32
  }
  func.func @transform_1(%arg0: i32, %arg1: i32) -> (i32, i32) {
    %c0_i32 = arith.constant 0 : i32
    %c0_i32_0 = arith.constant 0 : i32
    return %c0_i32, %arg1 : i32, i32
  }
  func.func @transform_2(%arg0: i32, %arg1: i32) -> (i32, i32) {
    %c0_i32 = arith.constant 0 : i32
    %c0_i32_0 = arith.constant 0 : i32
    return %c0_i32, %arg1 : i32, i32
  }
  func.func @transform_3(%arg0: i32, %arg1: i32) -> (i32, i32) {
    %c0_i32 = arith.constant 0 : i32
    %c0_i32_0 = arith.constant 0 : i32
    return %arg1, %c0_i32 : i32, i32
  }
  func.func @transform_4(%arg0: i32, %arg1: i32) -> (i32, i32) {
    %c0_i32 = arith.constant 0 : i32
    %c0_i32_0 = arith.constant 0 : i32
    %c0_i32_1 = arith.constant 0 : i32
    return %c0_i32, %c0_i32_0 : i32, i32
  }
  func.func @transform_5(%arg0: i32, %arg1: i32) -> (i32, i32) {
    %c0_i32 = arith.constant 0 : i32
    %c0_i32_0 = arith.constant 0 : i32
    return %arg0, %c0_i32 : i32, i32
  }
}

</mosaic_0001>

<bundles_post_ra>
// kernel: feed_forward.1
= control target key start
LH: loop header
LB: loop body
LE: loop exit
PB: predicated region body
PF: predicated region fallthrough
CT: control target
= control target key end

     0   :  { %s3820_s0 = inlined_call_operand.hbm [shape: f32[128,256], index: 0, kind: input, shape index: {}]   ;;  %s3821_s1 = inlined_call_operand.hbm [shape: f32[256,1024], index: 1, kind: input, shape index: {}]   ;;  %s3822_s2 = inlined_call_operand.hbm [shape: f32[1,1024], index: 2, kind: input, shape index: {}]   ;;  %s3823_s3 = inlined_call_operand.hbm [shape: f32[1024,256], index: 3, kind: input, shape index: {}]   ;;  %s3824_s4 = inlined_call_operand.vmem [shape: f32[1,256], index: 4, kind: input, shape index: {}]   ;;  %s3825_s5 = inlined_call_operand.hbm [shape: f32[128,256], index: 5, kind: output, shape index: {}]  }
   0x1   :  { %3911 = sst [smem:[#allocation38_spill]] %s3820_s0 }
   0x2   :  { %3912 = sst [smem:[#allocation39_spill]] %s3821_s1 }
   0x3   :  { %10 = vsyncpa [#allocation4], 0 }
   0x4   :  { %11 = vsyncpa [#allocation7], 0 }
   0x5   :  { %13 = vsyncpa [#allocation7 + $0x1], 0 }
   0x6   :  { %14 = vsyncpa [#allocation10], 0 }
   0x7   :  { %16 = vsyncpa [#allocation10 + $0x1], 0 }
   0x8   :  { %17 = vsyncpa [#allocation5], 0  ;;  %s2503_s18 = smov 0   ;;  %s2505_s19 = smov 0  }
   0x9   :  { %s2507_s20 = smov 0   ;;  %s2509_s21 = smov 0  }
   0xa   :  { %s2511_s22 = smov 0   ;;  %s2513_s23 = smov 0  }
   0xb LB: > { %3913 = sst [smem:[#allocation16_spill]] %s2449_s20  ;;  %s32_s24 = sadd.s32 1, %s2457_s22  ;;  %s2461_s23 = sphi %s2513_s23, %s23_s23   ;;  %s2457_s22 = sphi %s2511_s22, %s4042_s22   ;;  %s2453_s21 = sphi %s2509_s21, %s4041_s21   ;;  %s2449_s20 = sphi %s2507_s20, %s4037_s20   ;;  %s2445_s19 = sphi %s2505_s19, %s4040_s19   ;;  %s2441_s18 = sphi %s2503_s18, %s4039_s18  }
   0xc   : > { %3914 = sst [smem:[#allocation17_spill]] %s2461_s23  ;;  %s68_s25 = sadd.s32 1, %s2449_s20 }
   0xd   : > { %p33_p0 = scmp.ge.s32.totalorder %s32_s24, 2  ;;  %p75_p1 = scmp.ne.s32.totalorder %s2449_s20, %s2445_s19 }
   0xe   : > { %p76_p2 = scmp.eq.s32.totalorder %s2461_s23, 0  ;;  %p2189_p4 = scmp.lt.s32.totalorder %s2461_s23, 2 }
   0xf   : > { %s4044_s24 = smov (%p33_p0, %s32_s24), 0  ;;  %s225_s28 = sand.u32 1, %s2461_s23  }
  0x10   : > { %3915 = sst [smem:[#allocation18_spill]] %s4044_s24  ;;  %p2540_p3 = por %p76_p2, %p75_p1 }
  0x11   : > { %s65_s27 = ssub.s32 %s2457_s22, %s4044_s24  ;;  %s2549_s29 = sand.u32 1, %s2449_s20  }
  0x12   : > { %p66_p5 = scmp.eq.s32.totalorder %s65_s27, 0  ;;  %s2157_s30 = sshll.u32 %s2457_s22, 5 }
  0x13   : > { %s3826_s7 = sshll.u32 %s2549_s29, 10  ;;  %s3918_s1 = sld [smem:[#allocation39_spill]] }
  0x14   : > { %s2553_s6 = scalar_select %p66_p5, %s2449_s20, %s68_s25  }
  0x15   : > { %s229_s12 = scalar_lea.vmem [#allocation6], %s3826_s7  ;;  %p2565_p6 = pnand %p2189_p4, %p2540_p3 }
  0x16   : > { %3917 = sst [smem:[#allocation19_spill]] %s2553_s6  ;;  %s237_s13 = sshll.u32 %s229_s12, 4  ;;  %s238_s13 = int_to_ptr.vmem [resolvable:$true] %s237_s13 }
  0x17   : > { %s2569_s15 = scalar_lea.sflag [#allocation7], %s225_s28  ;;  %s2463_s16 = smov 1024  }
  0x18   : > { %s2464_s17 = smov 512   ;;  %s2465_s25 = smov 32  }
  0x19   : > { %s234_s10 = scalar_lea.hbm %s3918_s1, %s2157_s30  ;;  %s2575_s27 = sadd.s32 4294967295, %s2461_s23  }
  0x1a   : > { %s235_s11 = sshll.u32 %s234_s10, 4  ;;  %p81_p7 = scmp.ne.s32.totalorder %s2445_s19, %s2441_s18  ;;  %s236_s11 = int_to_ptr.hbm [resolvable:$true] %s235_s11 }
  0x1b   : > { %2181 = dma.hbm_to_vmem [thread:$0]  (!%p2565_p6), %s236_s11, 16384, %s238_s13, %s2569_s15, %s2463_s16, %s2464_s17, %s2465_s25  }
  0x1c   : > { %p82_p8 = scmp.eq.s32.totalorder %s2575_s27, 0  ;;  %p2134_p9 = scmp.ge.s32.totalorder %s2461_s23, 1 }
  0x1d   : > { %p191_p10 = scmp.lt.s32.totalorder %s2461_s23, 3  ;;  %s3921_s0 = sld [smem:[#allocation38_spill]] }
  0x1e   : > { %p2584_p11 = por %p82_p8, %p81_p7  ;;  %s2466_s18 = smov [#allocation3]  }
  0x1f   : > { %p2591_p12 = pnand %p2134_p9, %p191_p10  ;;  %s208_s10 = sshll.u32 %s2466_s18, 4  ;;  %s209_s10 = int_to_ptr.vmem [resolvable:$true] %s208_s10 }
  0x20   : > { %s2140_s11 = sshll.u32 %s2549_s29, 2  ;;  %s2141_s12 = sshll.u32 %s2457_s22, 2 }
  0x21   : > { %p2174_p13 = pneg %p2591_p12  ;;  %s255_s17 = scalar_lea.hbm %s3822_s2, %s2141_s12 }
  0x22   : > { %s2467_s25 = smov 256   ;;  %s2468_s28 = smov 16  }
  0x23   : > { %s206_s8 = sshll.u32 %s3921_s0, 4  ;;  %p2175_p0 = pnand %p2174_p13, %p82_p8  ;;  %s207_s8 = int_to_ptr.hbm [resolvable:$true] %s206_s8 }
  0x24   : > { %s257_s30 = sshll.u32 %s255_s17, 4  ;;  %s251_s7 = scalar_lea.vmem [#allocation8], %s2140_s11  ;;  %s258_s30 = int_to_ptr.hbm [resolvable:$true] %s257_s30 }
  0x25   : > { %2177 = dma.hbm_to_vmem [thread:$0]  (!%p2175_p0), %s207_s8, 4096, %s209_s10, [#allocation4], %s2467_s25, %s2467_s25, %s2468_s28  }
  0x26   : > { %s259_s0 = sshll.u32 %s251_s7, 4  ;;  %s2159_s18 = sshll.u32 %s2457_s22, 10  ;;  %s260_s0 = int_to_ptr.vmem [resolvable:$true] %s259_s0 }
  0x27   : > { %2184 = dma.hbm_to_vmem [thread:$0]  (!%p2565_p6), %s258_s30, 64, %s260_s0, %s2569_s15  }
  0x28   : > { %s3923_s1 = sshll.u32 %s2549_s29, 10  ;;  %s276_s12 = scalar_lea.hbm %s3823_s3, %s2159_s18 }
  0x29   : > { %s270_s24 = scalar_lea.vmem [#allocation9], %s3923_s1  ;;  %s277_s13 = sshll.u32 %s276_s12, 4  ;;  %s278_s13 = int_to_ptr.hbm [resolvable:$true] %s277_s13 }
  0x2a   : > { %s279_s6 = sshll.u32 %s270_s24, 4  ;;  %s267_s16 = scalar_lea.sflag [#allocation10], %s2549_s29  ;;  %s280_s6 = int_to_ptr.vmem [resolvable:$true] %s279_s6 }
  0x2b   : > { %2187 = dma.hbm_to_vmem [thread:$0]  (!%p2565_p6), %s278_s13, 16384, %s280_s6, %s267_s16, %s2467_s25, %s2467_s25, %s2468_s28  }
  0x2c   : > { %291 = sbr.rel (%p2591_p12) target bundleno = 825 (0x339), region = 40 }
  0x31   : > { %2424 = dma.done.wait (%p82_p8), [#allocation4], 4096  }
  0x32   : > { %2426 = vsyncadd (%p82_p8), [#allocation4], 4294963200  ;;  %s298_s0 = sand.u32 1, %s2575_s27   ;;  %s300_s1 = sand.u32 1, %s2445_s19  }
  0x33   : > { %s2148_s20 = sshll.u32 %s300_s1, 10  ;;  %s299_s23 = scalar_lea.sflag [#allocation7], %s298_s0 }
  0x34   : > { %s2624_s24 = scalar_lea.vmem [#allocation6], %s2148_s20 }
  0x35   : > { %2428 = dma.done.wait (%p2584_p11), %s299_s23, 16448  }
  0x36   : > { %2430 = vsyncadd (%p2584_p11), %s299_s23, 4294950848  ;;  %s2149_s29 = sshll.u32 %s300_s1, 2  ;;  %s319_s7 = scalar_lea.sflag [#allocation10], %s300_s1 }
  0x37   : > { %s2630_s6 = scalar_lea.vmem [#allocation8], %s2149_s29  ;;  %s2632_s14 = scalar_lea.vmem [#allocation9], %s2148_s20 }
  0x38   : > { %2432 = dma.done.wait (%p2584_p11), %s319_s7, 16384  }
  0x39   : > { %2434 = vsyncadd (%p2584_p11), %s319_s7, 4294950912  ;;  %p2151_p1 = scmp.ne.s32.totalorder %s2453_s21, 0 }
  0x3b   : > { %363 = sbr.rel (%p2151_p1) target bundleno = 97 (0x61), region = 60 }
  0x40   : > { %v2469_v0 = vmov 0.0  }
  0x41   : > { %364 = vst [vmem:[#allocation2 + $0xb0] sm:$0xff] %v2469_v0 }
  0x42   : > { %365 = vst [vmem:[#allocation2] sm:$0xff] %v2469_v0 }
  0x43   : > { %366 = vst [vmem:[#allocation2 + $0xd8] sm:$0xff] %v2469_v0 }
  0x44   : > { %367 = vst [vmem:[#allocation2 + $0x18] sm:$0xff] %v2469_v0 }
  0x45   : > { %368 = vst [vmem:[#allocation2 + $0x50] sm:$0xff] %v2469_v0 }
  0x46   : > { %369 = vst [vmem:[#allocation2 + $0x68] sm:$0xff] %v2469_v0 }
  0x47   : > { %370 = vst [vmem:[#allocation2 + $0x30] sm:$0xff] %v2469_v0 }
  0x48   : > { %371 = vst [vmem:[#allocation2 + $0x48] sm:$0xff] %v2469_v0 }
  0x49   : > { %372 = vst [vmem:[#allocation2 + $0x80] sm:$0xff] %v2469_v0 }
  0x4a   : > { %373 = vst [vmem:[#allocation2 + $0x88] sm:$0xff] %v2469_v0 }
  0x4b   : > { %374 = vst [vmem:[#allocation2 + $0xe8] sm:$0xff] %v2469_v0 }
  0x4c   : > { %375 = vst [vmem:[#allocation2 + $0xb8] sm:$0xff] %v2469_v0 }
  0x4d   : > { %376 = vst [vmem:[#allocation2 + $0x60] sm:$0xff] %v2469_v0 }
  0x4e   : > { %377 = vst [vmem:[#allocation2 + $0xf0] sm:$0xff] %v2469_v0 }
  0x4f   : > { %378 = vst [vmem:[#allocation2 + $0x8] sm:$0xff] %v2469_v0 }
  0x50   : > { %379 = vst [vmem:[#allocation2 + $0x78] sm:$0xff] %v2469_v0 }
  0x51   : > { %380 = vst [vmem:[#allocation2 + $0x38] sm:$0xff] %v2469_v0 }
  0x52   : > { %381 = vst [vmem:[#allocation2 + $0x58] sm:$0xff] %v2469_v0 }
  0x53   : > { %382 = vst [vmem:[#allocation2 + $0x40] sm:$0xff] %v2469_v0 }
  0x54   : > { %383 = vst [vmem:[#allocation2 + $0xc8] sm:$0xff] %v2469_v0 }
  0x55   : > { %384 = vst [vmem:[#allocation2 + $0xe0] sm:$0xff] %v2469_v0 }
  0x56   : > { %385 = vst [vmem:[#allocation2 + $0x90] sm:$0xff] %v2469_v0 }
  0x57   : > { %386 = vst [vmem:[#allocation2 + $0x70] sm:$0xff] %v2469_v0 }
  0x58   : > { %387 = vst [vmem:[#allocation2 + $0xc0] sm:$0xff] %v2469_v0 }
  0x59   : > { %388 = vst [vmem:[#allocation2 + $0xa8] sm:$0xff] %v2469_v0 }
  0x5a   : > { %389 = vst [vmem:[#allocation2 + $0xd0] sm:$0xff] %v2469_v0 }
  0x5b   : > { %390 = vst [vmem:[#allocation2 + $0x10] sm:$0xff] %v2469_v0 }
  0x5c   : > { %391 = vst [vmem:[#allocation2 + $0x28] sm:$0xff] %v2469_v0 }
  0x5d   : > { %392 = vst [vmem:[#allocation2 + $0xa0] sm:$0xff] %v2469_v0 }
  0x5e   : > { %393 = vst [vmem:[#allocation2 + $0xf8] sm:$0xff] %v2469_v0 }
  0x5f   : > { %394 = vst [vmem:[#allocation2 + $0x20] sm:$0xff] %v2469_v0 }
  0x60   : > { %395 = vst [vmem:[#allocation2 + $0x98] sm:$0xff] %v2469_v0 }
  0x61 PF: > { %v488_v1 = vld [vmem:[%s2624_s24 + $0x1e0] sm:$0xff]  ;;  %v489_v3 = vld [vmem:[%s2624_s24 + $0x1e8] sm:$0xff]  ;;  %p2152_p2 = scmp.ne.s32.totalorder %s2453_s21, 1 }
  0x62   : > { %v552_v2 = vld [vmem:[%s2624_s24 + $0x3e0] sm:$0xff]  ;;  %566 = vmatpush.msra.mxu0 %v488_v1  ;;  %v485_v6 = vld [vmem:[%s2624_s24 + $0x1c8] sm:$0xff]  ;;  %696 = vmatpush.msra.mxu2 %v489_v3  ;;  %v491_v3 = vld [vmem:[%s2624_s24 + $0x1f8] sm:$0xff] }
  0x63   : > { %631 = vmatpush.msra.mxu1 %v552_v2  ;;  %v484_v4 = vld [vmem:[%s2624_s24 + $0x1c0] sm:$0xff]  ;;  %v553_v7 = vld [vmem:[%s2624_s24 + $0x3e8] sm:$0xff] }
  0x64   : > { %v548_v5 = vld [vmem:[%s2624_s24 + $0x3c0] sm:$0xff]  ;;  %567 = vmatpush.msra.mxu0 %v484_v4  ;;  %v481_v10 = vld [vmem:[%s2624_s24 + $0x1a8] sm:$0xff]  ;;  %697 = vmatpush.msra.mxu2 %v485_v6  ;;  %v555_v4 = vld [vmem:[%s2624_s24 + $0x3f8] sm:$0xff] }
  0x65   : > { %v480_v8 = vld [vmem:[%s2624_s24 + $0x1a0] sm:$0xff]  ;;  %632 = vmatpush.msra.mxu1 %v548_v5  ;;  %v549_v11 = vld [vmem:[%s2624_s24 + $0x3c8] sm:$0xff]  ;;  %761 = vmatpush.msra.mxu3 %v553_v7  ;;  %v490_v5 = vld [vmem:[%s2624_s24 + $0x1f0] sm:$0xff] }
  0x66   : > { %v544_v9 = vld [vmem:[%s2624_s24 + $0x3a0] sm:$0xff]  ;;  %568 = vmatpush.msra.mxu0 %v480_v8  ;;  %v477_v14 = vld [vmem:[%s2624_s24 + $0x188] sm:$0xff]  ;;  %698 = vmatpush.msra.mxu2 %v481_v10  ;;  %v554_v6 = vld [vmem:[%s2624_s24 + $0x3f0] sm:$0xff] }
  0x67   : > { %v476_v12 = vld [vmem:[%s2624_s24 + $0x180] sm:$0xff]  ;;  %633 = vmatpush.msra.mxu1 %v544_v9  ;;  %v545_v15 = vld [vmem:[%s2624_s24 + $0x3a8] sm:$0xff]  ;;  %762 = vmatpush.msra.mxu3 %v549_v11  ;;  %v487_v7 = vld [vmem:[%s2624_s24 + $0x1d8] sm:$0xff] }
  0x68   : > { %v540_v13 = vld [vmem:[%s2624_s24 + $0x380] sm:$0xff]  ;;  %569 = vmatpush.msra.mxu0 %v476_v12  ;;  %v473_v18 = vld [vmem:[%s2624_s24 + $0x168] sm:$0xff]  ;;  %699 = vmatpush.msra.mxu2 %v477_v14  ;;  %v551_v8 = vld [vmem:[%s2624_s24 + $0x3d8] sm:$0xff] }
  0x69   : > { %v472_v16 = vld [vmem:[%s2624_s24 + $0x160] sm:$0xff]  ;;  %634 = vmatpush.msra.mxu1 %v540_v13  ;;  %v541_v19 = vld [vmem:[%s2624_s24 + $0x388] sm:$0xff]  ;;  %763 = vmatpush.msra.mxu3 %v545_v15  ;;  %v486_v9 = vld [vmem:[%s2624_s24 + $0x1d0] sm:$0xff] }
  0x6a   : > { %v536_v17 = vld [vmem:[%s2624_s24 + $0x360] sm:$0xff]  ;;  %570 = vmatpush.msra.mxu0 %v472_v16  ;;  %v469_v22 = vld [vmem:[%s2624_s24 + $0x148] sm:$0xff]  ;;  %700 = vmatpush.msra.mxu2 %v473_v18  ;;  %v550_v10 = vld [vmem:[%s2624_s24 + $0x3d0] sm:$0xff] }
  0x6b   : > { %v468_v20 = vld [vmem:[%s2624_s24 + $0x140] sm:$0xff]  ;;  %635 = vmatpush.msra.mxu1 %v536_v17  ;;  %v537_v23 = vld [vmem:[%s2624_s24 + $0x368] sm:$0xff]  ;;  %764 = vmatpush.msra.mxu3 %v541_v19  ;;  %v483_v11 = vld [vmem:[%s2624_s24 + $0x1b8] sm:$0xff] }
  0x6c   : > { %v532_v21 = vld [vmem:[%s2624_s24 + $0x340] sm:$0xff]  ;;  %571 = vmatpush.msra.mxu0 %v468_v20  ;;  %v465_v26 = vld [vmem:[%s2624_s24 + $0x128] sm:$0xff]  ;;  %701 = vmatpush.msra.mxu2 %v469_v22  ;;  %v547_v12 = vld [vmem:[%s2624_s24 + $0x3b8] sm:$0xff] }
  0x6d   : > { %v464_v24 = vld [vmem:[%s2624_s24 + $0x120] sm:$0xff]  ;;  %636 = vmatpush.msra.mxu1 %v532_v21  ;;  %v533_v27 = vld [vmem:[%s2624_s24 + $0x348] sm:$0xff]  ;;  %765 = vmatpush.msra.mxu3 %v537_v23  ;;  %v482_v13 = vld [vmem:[%s2624_s24 + $0x1b0] sm:$0xff] }
  0x6e   : > { %v528_v25 = vld [vmem:[%s2624_s24 + $0x320] sm:$0xff]  ;;  %572 = vmatpush.msra.mxu0 %v464_v24  ;;  %v461_v30 = vld [vmem:[%s2624_s24 + $0x108] sm:$0xff]  ;;  %702 = vmatpush.msra.mxu2 %v465_v26  ;;  %v2722_v14 = vld [vmem:[#allocation3 + $0x10] sm:$0xff] }
  0x6f   : > { %v460_v28 = vld [vmem:[%s2624_s24 + $0x100] sm:$0xff]  ;;  %637 = vmatpush.msra.mxu1 %v528_v25  ;;  %v529_v31 = vld [vmem:[%s2624_s24 + $0x328] sm:$0xff]  ;;  %766 = vmatpush.msra.mxu3 %v533_v27  ;;  %v2724_v15 = vld [vmem:[#allocation3 + $0x18] sm:$0xff] }
  0x70   : > { %v524_v29 = vld [vmem:[%s2624_s24 + $0x300] sm:$0xff]  ;;  %573 = vmatpush.msra.mxu0 %v460_v28  ;;  %v457_v34 = vld [vmem:[%s2624_s24 + $0xe8] sm:$0xff]  ;;  %703 = vmatpush.msra.mxu2 %v461_v30  ;;  %v546_v16 = vld [vmem:[%s2624_s24 + $0x3b0] sm:$0xff] }
  0x71   : > { %v456_v32 = vld [vmem:[%s2624_s24 + $0xe0] sm:$0xff]  ;;  %638 = vmatpush.msra.mxu1 %v524_v29  ;;  %v525_v35 = vld [vmem:[%s2624_s24 + $0x308] sm:$0xff]  ;;  %767 = vmatpush.msra.mxu3 %v529_v31  ;;  %v479_v17 = vld [vmem:[%s2624_s24 + $0x198] sm:$0xff] }
  0x72   : > { %v520_v33 = vld [vmem:[%s2624_s24 + $0x2e0] sm:$0xff]  ;;  %574 = vmatpush.msra.mxu0 %v456_v32  ;;  %v453_v38 = vld [vmem:[%s2624_s24 + $0xc8] sm:$0xff]  ;;  %704 = vmatpush.msra.mxu2 %v457_v34  ;;  %v543_v18 = vld [vmem:[%s2624_s24 + $0x398] sm:$0xff] }
  0x73   : > { %v452_v36 = vld [vmem:[%s2624_s24 + $0xc0] sm:$0xff]  ;;  %639 = vmatpush.msra.mxu1 %v520_v33  ;;  %v521_v39 = vld [vmem:[%s2624_s24 + $0x2e8] sm:$0xff]  ;;  %768 = vmatpush.msra.mxu3 %v525_v35  ;;  %v478_v19 = vld [vmem:[%s2624_s24 + $0x190] sm:$0xff] }
  0x74   : > { %v516_v37 = vld [vmem:[%s2624_s24 + $0x2c0] sm:$0xff]  ;;  %575 = vmatpush.msra.mxu0 %v452_v36  ;;  %v449_v42 = vld [vmem:[%s2624_s24 + $0xa8] sm:$0xff]  ;;  %705 = vmatpush.msra.mxu2 %v453_v38  ;;  %v542_v20 = vld [vmem:[%s2624_s24 + $0x390] sm:$0xff] }
  0x75   : > { %v448_v40 = vld [vmem:[%s2624_s24 + $0xa0] sm:$0xff]  ;;  %640 = vmatpush.msra.mxu1 %v516_v37  ;;  %v517_v43 = vld [vmem:[%s2624_s24 + $0x2c8] sm:$0xff]  ;;  %769 = vmatpush.msra.mxu3 %v521_v39  ;;  %v475_v21 = vld [vmem:[%s2624_s24 + $0x178] sm:$0xff] }
  0x76   : > { %v512_v41 = vld [vmem:[%s2624_s24 + $0x2a0] sm:$0xff]  ;;  %576 = vmatpush.msra.mxu0 %v448_v40  ;;  %v445_v46 = vld [vmem:[%s2624_s24 + $0x88] sm:$0xff]  ;;  %706 = vmatpush.msra.mxu2 %v449_v42  ;;  %v539_v22 = vld [vmem:[%s2624_s24 + $0x378] sm:$0xff] }
  0x77   : > { %v444_v44 = vld [vmem:[%s2624_s24 + $0x80] sm:$0xff]  ;;  %641 = vmatpush.msra.mxu1 %v512_v41  ;;  %v513_v47 = vld [vmem:[%s2624_s24 + $0x2a8] sm:$0xff]  ;;  %770 = vmatpush.msra.mxu3 %v517_v43  ;;  %v474_v23 = vld [vmem:[%s2624_s24 + $0x170] sm:$0xff] }
  0x78   : > { %v508_v45 = vld [vmem:[%s2624_s24 + $0x280] sm:$0xff]  ;;  %577 = vmatpush.msra.mxu0 %v444_v44  ;;  %v441_v50 = vld [vmem:[%s2624_s24 + $0x68] sm:$0xff]  ;;  %707 = vmatpush.msra.mxu2 %v445_v46  ;;  %v538_v24 = vld [vmem:[%s2624_s24 + $0x370] sm:$0xff] }
  0x79   : > { %v440_v48 = vld [vmem:[%s2624_s24 + $0x60] sm:$0xff]  ;;  %642 = vmatpush.msra.mxu1 %v508_v45  ;;  %v509_v51 = vld [vmem:[%s2624_s24 + $0x288] sm:$0xff]  ;;  %771 = vmatpush.msra.mxu3 %v513_v47  ;;  %v471_v25 = vld [vmem:[%s2624_s24 + $0x158] sm:$0xff] }
  0x7a   : > { %v504_v49 = vld [vmem:[%s2624_s24 + $0x260] sm:$0xff]  ;;  %578 = vmatpush.msra.mxu0 %v440_v48  ;;  %v437_v54 = vld [vmem:[%s2624_s24 + $0x48] sm:$0xff]  ;;  %708 = vmatpush.msra.mxu2 %v441_v50  ;;  %v535_v26 = vld [vmem:[%s2624_s24 + $0x358] sm:$0xff] }
  0x7b   : > { %v436_v52 = vld [vmem:[%s2624_s24 + $0x40] sm:$0xff]  ;;  %643 = vmatpush.msra.mxu1 %v504_v49  ;;  %v505_v55 = vld [vmem:[%s2624_s24 + $0x268] sm:$0xff]  ;;  %772 = vmatpush.msra.mxu3 %v509_v51  ;;  %v470_v27 = vld [vmem:[%s2624_s24 + $0x150] sm:$0xff] }
  0x7c   : > { %v500_v53 = vld [vmem:[%s2624_s24 + $0x240] sm:$0xff]  ;;  %579 = vmatpush.msra.mxu0 %v436_v52  ;;  %v433_v58 = vld [vmem:[%s2624_s24 + $0x28] sm:$0xff]  ;;  %709 = vmatpush.msra.mxu2 %v437_v54  ;;  %v534_v30 = vld [vmem:[%s2624_s24 + $0x350] sm:$0xff] }
  0x7d   : > { %v432_v56 = vld [vmem:[%s2624_s24 + $0x20] sm:$0xff]  ;;  %644 = vmatpush.msra.mxu1 %v500_v53  ;;  %v501_v59 = vld [vmem:[%s2624_s24 + $0x248] sm:$0xff]  ;;  %773 = vmatpush.msra.mxu3 %v505_v55  ;;  %v467_v31 = vld [vmem:[%s2624_s24 + $0x138] sm:$0xff] }
  0x7e   : > { %v496_v57 = vld [vmem:[%s2624_s24 + $0x220] sm:$0xff]  ;;  %580 = vmatpush.msra.mxu0 %v432_v56  ;;  %v429_v62 = vld [vmem:[%s2624_s24 + $0x8] sm:$0xff]  ;;  %710 = vmatpush.msra.mxu2 %v433_v58  ;;  %v531_v32 = vld [vmem:[%s2624_s24 + $0x338] sm:$0xff] }
  0x7f   : > { %v428_v60 = vld [vmem:[%s2624_s24] sm:$0xff]  ;;  %645 = vmatpush.msra.mxu1 %v496_v57  ;;  %v497_v63 = vld [vmem:[%s2624_s24 + $0x228] sm:$0xff]  ;;  %774 = vmatpush.msra.mxu3 %v501_v59  ;;  %v466_v33 = vld [vmem:[%s2624_s24 + $0x130] sm:$0xff] }
  0x80   : > { %v492_v61 = vld [vmem:[%s2624_s24 + $0x200] sm:$0xff]  ;;  %v2704_v1 = vld [vmem:[#allocation3 + $0x8] sm:$0xff]  ;;  %581 = vmatpush.msra.mxu0 %v428_v60  ;;  %711 = vmatpush.msra.mxu2 %v429_v62  ;;  %v530_v34 = vld [vmem:[%s2624_s24 + $0x330] sm:$0xff] }
  0x81   : > { %v2702_v0 = vld [vmem:[#allocation3] sm:$0xff]  ;;  %646 = vmatpush.msra.mxu1 %v492_v61  ;;  %v493_v2 = vld [vmem:[%s2624_s24 + $0x208] sm:$0xff]  ;;  %775 = vmatpush.msra.mxu3 %v497_v63  ;;  %v2755_v35 = vld [vmem:[#allocation3 + $0x30] sm:$0xff] }
  0x82   : > { %582 = vmatmul.f32.vlgmr.msra.gmra.mxu0 %v2702_v0  ;;  %647 = vmatmul.f32.vlgmr.msra.gmra.mxu1 %v2704_v1  ;;  %v2742_v28 = vld [vmem:[#allocation3 + $0x20] sm:$0xff]  ;;  %v2744_v29 = vld [vmem:[#allocation3 + $0x28] sm:$0xff]  ;;  %v2757_v36 = vld [vmem:[#allocation3 + $0x38] sm:$0xff] }
  0x83   : > { %712 = vmatmul.f32.vlgmr.msra.gmra.mxu2 %v2702_v0  ;;  %776 = vmatpush.msra.mxu3 %v493_v2  ;;  %v463_v37 = vld [vmem:[%s2624_s24 + $0x118] sm:$0xff]  ;;  %v462_v39 = vld [vmem:[%s2624_s24 + $0x110] sm:$0xff]  ;;  %v2767_v41 = vld [vmem:[#allocation3 + $0x40] sm:$0xff] }
  0x84   : > { %956 = vmatpush.msrb.mxu2 %v491_v3  ;;  %777 = vmatmul.f32.vlgmr.msra.gmra.mxu3 %v2704_v1  ;;  %v527_v38 = vld [vmem:[%s2624_s24 + $0x318] sm:$0xff]  ;;  %v526_v40 = vld [vmem:[%s2624_s24 + $0x310] sm:$0xff]  ;;  %v2769_v42 = vld [vmem:[#allocation3 + $0x48] sm:$0xff] }
  0x85   : > { %1021 = vmatpush.msrb.mxu3 %v555_v4  ;;  %826 = vmatpush.msrb.mxu0 %v490_v5  ;;  %v459_v43 = vld [vmem:[%s2624_s24 + $0xf8] sm:$0xff]  ;;  %v458_v45 = vld [vmem:[%s2624_s24 + $0xf0] sm:$0xff]  ;;  %v2791_v53 = vld [vmem:[#allocation3 + $0x60] sm:$0xff] }
  0x86   : > { %891 = vmatpush.msrb.mxu1 %v554_v6  ;;  %957 = vmatpush.msrb.mxu2 %v487_v7  ;;  %v523_v44 = vld [vmem:[%s2624_s24 + $0x2f8] sm:$0xff]  ;;  %v522_v46 = vld [vmem:[%s2624_s24 + $0x2f0] sm:$0xff]  ;;  %v2793_v54 = vld [vmem:[#allocation3 + $0x68] sm:$0xff] }
  0x87   : > { %1022 = vmatpush.msrb.mxu3 %v551_v8  ;;  %827 = vmatpush.msrb.mxu0 %v486_v9  ;;  %v2779_v47 = vld [vmem:[#allocation3 + $0x50] sm:$0xff]  ;;  %v2781_v48 = vld [vmem:[#allocation3 + $0x58] sm:$0xff]  ;;  %v2815_v3 = vld [vmem:[#allocation3 + $0x80] sm:$0xff] }
  0x88   : > { %892 = vmatpush.msrb.mxu1 %v550_v10  ;;  %958 = vmatpush.msrb.mxu2 %v483_v11  ;;  %v455_v49 = vld [vmem:[%s2624_s24 + $0xd8] sm:$0xff]  ;;  %v454_v51 = vld [vmem:[%s2624_s24 + $0xd0] sm:$0xff]  ;;  %v2817_v4 = vld [vmem:[#allocation3 + $0x88] sm:$0xff] }
  0x89   : > { %1023 = vmatpush.msrb.mxu3 %v547_v12  ;;  %828 = vmatpush.msrb.mxu0 %v482_v13  ;;  %v519_v50 = vld [vmem:[%s2624_s24 + $0x2d8] sm:$0xff]  ;;  %v518_v52 = vld [vmem:[%s2624_s24 + $0x2d0] sm:$0xff] }
  0x8a   : > { %585 = vmatmul.f32.gmra.mxu0 %v2722_v14  ;;  %650 = vmatmul.f32.gmra.mxu1 %v2724_v15  ;;  %v451_v55 = vld [vmem:[%s2624_s24 + $0xb8] sm:$0xff]  ;;  %v450_v57 = vld [vmem:[%s2624_s24 + $0xb0] sm:$0xff] }
  0x8b   : > { %715 = vmatmul.f32.gmra.mxu2 %v2722_v14  ;;  %893 = vmatpush.msrb.mxu1 %v546_v16  ;;  %v515_v56 = vld [vmem:[%s2624_s24 + $0x2b8] sm:$0xff]  ;;  %v514_v58 = vld [vmem:[%s2624_s24 + $0x2b0] sm:$0xff] }
  0x8c   : > { %780 = vmatmul.f32.gmra.mxu3 %v2724_v15  ;;  %959 = vmatpush.msrb.mxu2 %v479_v17  ;;  %v2803_v59 = vld [vmem:[#allocation3 + $0x70] sm:$0xff]  ;;  %v2805_v60 = vld [vmem:[#allocation3 + $0x78] sm:$0xff]  ;;  %v2839_v17 = vld [vmem:[#allocation3 + $0xa0] sm:$0xff] }
  0x8d   : > { %1024 = vmatpush.msrb.mxu3 %v543_v18  ;;  %829 = vmatpush.msrb.mxu0 %v478_v19  ;;  %v447_v61 = vld [vmem:[%s2624_s24 + $0x98] sm:$0xff]  ;;  %v446_v63 = vld [vmem:[%s2624_s24 + $0x90] sm:$0xff]  ;;  %v2841_v18 = vld [vmem:[#allocation3 + $0xa8] sm:$0xff] }
  0x8e   : > { %894 = vmatpush.msrb.mxu1 %v542_v20  ;;  %960 = vmatpush.msrb.mxu2 %v475_v21  ;;  %v511_v62 = vld [vmem:[%s2624_s24 + $0x298] sm:$0xff]  ;;  %v510_v2 = vld [vmem:[%s2624_s24 + $0x290] sm:$0xff] }
  0x8f   : > { %1025 = vmatpush.msrb.mxu3 %v539_v22  ;;  %830 = vmatpush.msrb.mxu0 %v474_v23  ;;  %v443_v5 = vld [vmem:[%s2624_s24 + $0x78] sm:$0xff]  ;;  %v442_v7 = vld [vmem:[%s2624_s24 + $0x70] sm:$0xff] }
  0x90   : > { %895 = vmatpush.msrb.mxu1 %v538_v24  ;;  %961 = vmatpush.msrb.mxu2 %v471_v25  ;;  %v507_v6 = vld [vmem:[%s2624_s24 + $0x278] sm:$0xff]  ;;  %v506_v8 = vld [vmem:[%s2624_s24 + $0x270] sm:$0xff] }
  0x91   : > { %1026 = vmatpush.msrb.mxu3 %v535_v26  ;;  %831 = vmatpush.msrb.mxu0 %v470_v27  ;;  %v2827_v9 = vld [vmem:[#allocation3 + $0x90] sm:$0xff]  ;;  %v2829_v10 = vld [vmem:[#allocation3 + $0x98] sm:$0xff] }
  0x92   : > { %588 = vmatmul.f32.gmra.mxu0 %v2742_v28  ;;  %653 = vmatmul.f32.gmra.mxu1 %v2744_v29  ;;  %v439_v11 = vld [vmem:[%s2624_s24 + $0x58] sm:$0xff]  ;;  %v438_v13 = vld [vmem:[%s2624_s24 + $0x50] sm:$0xff] }
  0x93   : > { %718 = vmatmul.f32.gmra.mxu2 %v2742_v28  ;;  %896 = vmatpush.msrb.mxu1 %v534_v30  ;;  %v503_v12 = vld [vmem:[%s2624_s24 + $0x258] sm:$0xff]  ;;  %v502_v16 = vld [vmem:[%s2624_s24 + $0x250] sm:$0xff]  ;;  %v2862_v30 = vld [vmem:[#allocation3 + $0xc0] sm:$0xff] }
  0x94   : > { %783 = vmatmul.f32.gmra.mxu3 %v2744_v29  ;;  %962 = vmatpush.msrb.mxu2 %v467_v31  ;;  %v435_v19 = vld [vmem:[%s2624_s24 + $0x38] sm:$0xff]  ;;  %v434_v21 = vld [vmem:[%s2624_s24 + $0x30] sm:$0xff]  ;;  %v2864_v31 = vld [vmem:[#allocation3 + $0xc8] sm:$0xff] }
  0x95   : > { %1027 = vmatpush.msrb.mxu3 %v531_v32  ;;  %832 = vmatpush.msrb.mxu0 %v466_v33  ;;  %v499_v20 = vld [vmem:[%s2624_s24 + $0x238] sm:$0xff]  ;;  %v498_v22 = vld [vmem:[%s2624_s24 + $0x230] sm:$0xff] }
  0x96   : > { %897 = vmatpush.msrb.mxu1 %v530_v34  ;;  %963 = vmatpush.msrb.mxu2 %v463_v37  ;;  %v2851_v23 = vld [vmem:[#allocation3 + $0xb0] sm:$0xff]  ;;  %v2853_v24 = vld [vmem:[#allocation3 + $0xb8] sm:$0xff] }
  0x97   : > { %1028 = vmatpush.msrb.mxu3 %v527_v38  ;;  %833 = vmatpush.msrb.mxu0 %v462_v39  ;;  %v431_v25 = vld [vmem:[%s2624_s24 + $0x18] sm:$0xff]  ;;  %v430_v27 = vld [vmem:[%s2624_s24 + $0x10] sm:$0xff]  ;;  %v2881_v39 = vld [vmem:[#allocation3 + $0xe0] sm:$0xff] }
  0x98   : > { %898 = vmatpush.msrb.mxu1 %v526_v40  ;;  %964 = vmatpush.msrb.mxu2 %v459_v43  ;;  %v495_v26 = vld [vmem:[%s2624_s24 + $0x218] sm:$0xff]  ;;  %v494_v32 = vld [vmem:[%s2624_s24 + $0x210] sm:$0xff]  ;;  %v2883_v40 = vld [vmem:[#allocation3 + $0xe8] sm:$0xff] }
  0x99   : > { %1029 = vmatpush.msrb.mxu3 %v523_v44  ;;  %834 = vmatpush.msrb.mxu0 %v458_v45  ;;  %v2871_v33 = vld [vmem:[#allocation3 + $0xd0] sm:$0xff]  ;;  %v2873_v34 = vld [vmem:[#allocation3 + $0xd8] sm:$0xff]  ;;  %v1274_v45 = vld [vmem:[%s2632_s14 + $0x2e0] sm:$0xff] }
  0x9a   : > { %591 = vmatmul.f32.gmra.mxu0 %v2755_v35  ;;  %656 = vmatmul.f32.gmra.mxu1 %v2757_v36  ;;  %v1276_v37 = vld [vmem:[%s2632_s14 + $0x2f0] sm:$0xff] }
  0x9b   : > { %721 = vmatmul.f32.gmra.mxu2 %v2755_v35  ;;  %899 = vmatpush.msrb.mxu1 %v522_v46  ;;  %v1308_v38 = vld [vmem:[%s2632_s14 + $0x3f0] sm:$0xff]  ;;  %v1306_v46 = vld [vmem:[%s2632_s14 + $0x3e0] sm:$0xff] }
  0x9c   : > { %786 = vmatmul.f32.gmra.mxu3 %v2757_v36  ;;  %965 = vmatpush.msrb.mxu2 %v455_v49  ;;  %v1212_v43 = vld [vmem:[%s2632_s14 + $0xf0] sm:$0xff]  ;;  %v2893_v49 = vld [vmem:[#allocation3 + $0xf0] sm:$0xff] }
  0x9d   : > { %1030 = vmatpush.msrb.mxu3 %v519_v50  ;;  %835 = vmatpush.msrb.mxu0 %v454_v51  ;;  %v1244_v44 = vld [vmem:[%s2632_s14 + $0x1f0] sm:$0xff]  ;;  %v1210_v51 = vld [vmem:[%s2632_s14 + $0xe0] sm:$0xff] }
  0x9e   : > { %900 = vmatpush.msrb.mxu1 %v518_v52  ;;  %966 = vmatpush.msrb.mxu2 %v451_v55  ;;  %v2895_v50 = vld [vmem:[#allocation3 + $0xf8] sm:$0xff]  ;;  %v1242_v52 = vld [vmem:[%s2632_s14 + $0x1e0] sm:$0xff] }
  0x9f   : > { %1031 = vmatpush.msrb.mxu3 %v515_v56  ;;  %836 = vmatpush.msrb.mxu0 %v450_v57  ;;  %v1272_v55 = vld [vmem:[%s2632_s14 + $0x2d0] sm:$0xff] }
  0xa0   : > { %901 = vmatpush.msrb.mxu1 %v514_v58  ;;  %967 = vmatpush.msrb.mxu2 %v447_v61  ;;  %v1304_v56 = vld [vmem:[%s2632_s14 + $0x3d0] sm:$0xff] }
  0xa1   : > { %1032 = vmatpush.msrb.mxu3 %v511_v62  ;;  %837 = vmatpush.msrb.mxu0 %v446_v63  ;;  %v1208_v61 = vld [vmem:[%s2632_s14 + $0xd0] sm:$0xff]  ;;  %v2912_v63 = vld [vmem:[%s2630_s6] sm:$0xf] }
  0xa2   : > { %594 = vmatmul.f32.gmra.mxu0 %v2767_v41  ;;  %659 = vmatmul.f32.gmra.mxu1 %v2769_v42  ;;  %v1240_v62 = vld [vmem:[%s2632_s14 + $0x1d0] sm:$0xff] }
  0xa3   : > { %724 = vmatmul.f32.gmra.mxu2 %v2767_v41  ;;  %902 = vmatpush.msrb.mxu1 %v510_v2  ;;  %v2918_v2 = vperm.slane %v2912_v63, 1 }
  0xa4   : > { %789 = vmatmul.f32.gmra.mxu3 %v2769_v42  ;;  %968 = vmatpush.msrb.mxu2 %v443_v5  ;;  %v1270_v5 = vld [vmem:[%s2632_s14 + $0x2c0] sm:$0xff] }
  0xa5   : > { %1033 = vmatpush.msrb.mxu3 %v507_v6  ;;  %838 = vmatpush.msrb.mxu0 %v442_v7  ;;  %v1302_v6 = vld [vmem:[%s2632_s14 + $0x3c0] sm:$0xff] }
  0xa6   : > { %903 = vmatpush.msrb.mxu1 %v506_v8  ;;  %969 = vmatpush.msrb.mxu2 %v439_v11 }
  0xa7   : > { %1034 = vmatpush.msrb.mxu3 %v503_v12  ;;  %839 = vmatpush.msrb.mxu0 %v438_v13  ;;  %v1206_v13 = vld [vmem:[%s2632_s14 + $0xc0] sm:$0xff] }
  0xa8   : > { %904 = vmatpush.msrb.mxu1 %v502_v16  ;;  %970 = vmatpush.msrb.mxu2 %v435_v19  ;;  %v1268_v19 = vld [vmem:[%s2632_s14 + $0x2b0] sm:$0xff] }
  0xa9   : > { %1035 = vmatpush.msrb.mxu3 %v499_v20  ;;  %840 = vmatpush.msrb.mxu0 %v434_v21  ;;  %v1300_v20 = vld [vmem:[%s2632_s14 + $0x3b0] sm:$0xff] }
  0xaa   : > { %597 = vmatmul.f32.gmra.mxu0 %v2779_v47  ;;  %662 = vmatmul.f32.gmra.mxu1 %v2781_v48 }
  0xab   : > { %727 = vmatmul.f32.gmra.mxu2 %v2779_v47  ;;  %905 = vmatpush.msrb.mxu1 %v498_v22 }
  0xac   : > { %792 = vmatmul.f32.gmra.mxu3 %v2781_v48  ;;  %971 = vmatpush.msrb.mxu2 %v431_v25 }
  0xad   : > { %1036 = vmatpush.msrb.mxu3 %v495_v26  ;;  %841 = vmatpush.msrb.mxu0 %v430_v27  ;;  %v1204_v27 = vld [vmem:[%s2632_s14 + $0xb0] sm:$0xff] }
  0xae   : > { %906 = vmatpush.msrb.mxu1 %v494_v32  ;;  %1440 = vmatpush.msra.mxu2 %v1276_v37  ;;  %v1236_v32 = vld [vmem:[%s2632_s14 + $0x1b0] sm:$0xff] }
  0xaf   : > { %1505 = vmatpush.msra.mxu3 %v1308_v38  ;;  %1310 = vmatpush.msra.mxu0 %v1212_v43  ;;  %v1298_v38 = vld [vmem:[%s2632_s14 + $0x3a0] sm:$0xff] }
  0xb0   : > { %1375 = vmatpush.msra.mxu1 %v1244_v44  ;;  %1441 = vmatpush.msra.mxu2 %v1274_v45 }
  0xb1   : > { %1506 = vmatpush.msra.mxu3 %v1306_v46  ;;  %1311 = vmatpush.msra.mxu0 %v1210_v51  ;;  %v1202_v51 = vld [vmem:[%s2632_s14 + $0xa0] sm:$0xff] }
  0xb2   : > { %600 = vmatmul.f32.gmra.mxu0 %v2791_v53  ;;  %665 = vmatmul.f32.gmra.mxu1 %v2793_v54 }
  0xb3   : > { %730 = vmatmul.f32.gmra.mxu2 %v2791_v53  ;;  %1376 = vmatpush.msra.mxu1 %v1242_v52  ;;  %v1234_v52 = vld [vmem:[%s2632_s14 + $0x1a0] sm:$0xff] }
  0xb4   : > { %795 = vmatmul.f32.gmra.mxu3 %v2793_v54  ;;  %1442 = vmatpush.msra.mxu2 %v1272_v55 }
  0xb5   : > { %1507 = vmatpush.msra.mxu3 %v1304_v56  ;;  %1312 = vmatpush.msra.mxu0 %v1208_v61  ;;  %v1296_v56 = vld [vmem:[%s2632_s14 + $0x390] sm:$0xff] }
  0xb6   : > { %1377 = vmatpush.msra.mxu1 %v1240_v62  ;;  %1443 = vmatpush.msra.mxu2 %v1270_v5 }
  0xb7   : > { %1508 = vmatpush.msra.mxu3 %v1302_v6  ;;  %1313 = vmatpush.msra.mxu0 %v1206_v13 }
  0xb8   : > { %1444 = vmatpush.msra.mxu2 %v1268_v19 }
  0xb9   : > { %1509 = vmatpush.msra.mxu3 %v1300_v20  ;;  %1314 = vmatpush.msra.mxu0 %v1204_v27  ;;  %v1230_v27 = vld [vmem:[%s2632_s14 + $0x180] sm:$0xff] }
  0xba   : > { %603 = vmatmul.f32.gmra.mxu0 %v2803_v59  ;;  %668 = vmatmul.f32.gmra.mxu1 %v2805_v60 }
  0xbb   : > { %733 = vmatmul.f32.gmra.mxu2 %v2803_v59  ;;  %1510 = vmatpush.msra.mxu3 %v1298_v38 }
  0xbc   : > { %798 = vmatmul.f32.gmra.mxu3 %v2805_v60  ;;  %1315 = vmatpush.msra.mxu0 %v1202_v51  ;;  %v1196_v51 = vld [vmem:[%s2632_s14 + $0x70] sm:$0xff] }
  0xbd   : > { %1511 = vmatpush.msra.mxu3 %v1296_v56 }
  0xc2   : > { %606 = vmatmul.f32.gmra.mxu0 %v2815_v3  ;;  %671 = vmatmul.f32.gmra.mxu1 %v2817_v4 }
  0xc3   : > { %736 = vmatmul.f32.gmra.mxu2 %v2815_v3 }
  0xc4   : > { %801 = vmatmul.f32.gmra.mxu3 %v2817_v4 }
  0xca   : > { %609 = vmatmul.f32.gmra.mxu0 %v2827_v9  ;;  %674 = vmatmul.f32.gmra.mxu1 %v2829_v10 }
  0xcb   : > { %739 = vmatmul.f32.gmra.mxu2 %v2827_v9 }
  0xcc   : > { %804 = vmatmul.f32.gmra.mxu3 %v2829_v10 }
  0xd2   : > { %612 = vmatmul.f32.gmra.mxu0 %v2839_v17  ;;  %677 = vmatmul.f32.gmra.mxu1 %v2841_v18 }
  0xd3   : > { %742 = vmatmul.f32.gmra.mxu2 %v2839_v17 }
  0xd4   : > { %807 = vmatmul.f32.gmra.mxu3 %v2841_v18 }
  0xda   : > { %615 = vmatmul.f32.gmra.mxu0 %v2851_v23  ;;  %680 = vmatmul.f32.gmra.mxu1 %v2853_v24 }
  0xdb   : > { %745 = vmatmul.f32.gmra.mxu2 %v2851_v23 }
  0xdc   : > { %810 = vmatmul.f32.gmra.mxu3 %v2853_v24 }
  0xe2   : > { %618 = vmatmul.f32.gmra.mxu0 %v2862_v30  ;;  %683 = vmatmul.f32.gmra.mxu1 %v2864_v31 }
  0xe3   : > { %748 = vmatmul.f32.gmra.mxu2 %v2862_v30 }
  0xe4   : > { %813 = vmatmul.f32.gmra.mxu3 %v2864_v31 }
  0xea   : > { %621 = vmatmul.f32.gmra.mxu0 %v2871_v33  ;;  %686 = vmatmul.f32.gmra.mxu1 %v2873_v34 }
  0xeb   : > { %751 = vmatmul.f32.gmra.mxu2 %v2871_v33 }
  0xec   : > { %816 = vmatmul.f32.gmra.mxu3 %v2873_v34 }
  0xf2   : > { %624 = vmatmul.f32.gmra.mxu0 %v2881_v39  ;;  %689 = vmatmul.f32.gmra.mxu1 %v2883_v40 }
  0xf3   : > { %754 = vmatmul.f32.gmra.mxu2 %v2881_v39 }
  0xf4   : > { %819 = vmatmul.f32.gmra.mxu3 %v2883_v40 }
  0xfa   : > { %627 = vmatmul.f32.gmra.mxu0 %v2893_v49  ;;  %692 = vmatmul.f32.gmra.mxu1 %v2895_v50 }
  0xfb   : > { %757 = vmatmul.f32.gmra.mxu2 %v2893_v49 }
  0xfc   : > { %822 = vmatmul.f32.gmra.mxu3 %v2895_v50 }
  0xff   : > { %v2905_v57 = vpop.f32.mrf.mxu0  ;;  %v2907_v58 = vpop.f32.mrf.mxu1 }
 0x102   : > { %842 = vmatmul.f32.vlgmr.msrb.gmra.mxu0 %v2702_v0  ;;  %907 = vmatmul.f32.vlgmr.msrb.gmra.mxu1 %v2704_v1 }
 0x103   : > { %972 = vmatmul.f32.vlgmr.msrb.gmra.mxu2 %v2702_v0  ;;  %v1238_v0 = vld [vmem:[%s2632_s14 + $0x1c0] sm:$0xff] }
 0x104   : > { %1037 = vmatmul.f32.vlgmr.msrb.gmra.mxu3 %v2704_v1  ;;  %1378 = vmatpush.msra.mxu1 %v1238_v0  ;;  %v1294_v0 = vld [vmem:[%s2632_s14 + $0x380] sm:$0xff] }
 0x105   : > { %1512 = vmatpush.msra.mxu3 %v1294_v0  ;;  %v1288_v0 = vld [vmem:[%s2632_s14 + $0x350] sm:$0xff] }
 0x106   : > { %v713_v7 = vpop.f32.mrf.mxu2  ;;  %1379 = vmatpush.msra.mxu1 %v1236_v32 }
 0x107   : > { %v714_v8 = vadd.f32 %v713_v7, %v2918_v2  ;;  %v2924_v11 = vpop.f32.mrf.mxu0  ;;  %v2926_v12 = vpop.f32.mrf.mxu1  ;;  %v1200_v7 = vld [vmem:[%s2632_s14 + $0x90] sm:$0xff] }
 0x108   : > { %v778_v16 = vpop.f32.mrf.mxu3  ;;  %1380 = vmatpush.msra.mxu1 %v1234_v52  ;;  %1316 = vmatpush.msra.mxu0 %v1200_v7  ;;  %v1228_v52 = vld [vmem:[%s2632_s14 + $0x170] sm:$0xff] }
 0x109   : > { %v2930_v1 = vadd.f32 %v778_v16, %v714_v8  ;;  %v1232_v8 = vld [vmem:[%s2632_s14 + $0x190] sm:$0xff] }
 0x10a   : > { %845 = vmatmul.f32.gmra.mxu0 %v2722_v14  ;;  %910 = vmatmul.f32.gmra.mxu1 %v2724_v15 }
 0x10b   : > { %3924 = vst [vmem:[#allocation20_spill] sm:$0xff] %v2930_v1  ;;  %975 = vmatmul.f32.gmra.mxu2 %v2722_v14  ;;  %1381 = vmatpush.msra.mxu1 %v1232_v8  ;;  %v1194_v8 = vld [vmem:[%s2632_s14 + $0x60] sm:$0xff] }
 0x10c   : > { %1040 = vmatmul.f32.gmra.mxu3 %v2724_v15  ;;  %v1266_v15 = vld [vmem:[%s2632_s14 + $0x2a0] sm:$0xff] }
 0x10d   : > { %1445 = vmatpush.msra.mxu2 %v1266_v15  ;;  %1382 = vmatpush.msra.mxu1 %v1230_v27 }
 0x10e   : > { %v716_v21 = vpop.f32.mrf.mxu2 }
 0x10f   : > { %v717_v22 = vadd.f32 %v716_v21, %v2918_v2  ;;  %v2939_v25 = vpop.f32.mrf.mxu0  ;;  %v2941_v26 = vpop.f32.mrf.mxu1  ;;  %1383 = vmatpush.msra.mxu1 %v1228_v52 }
 0x110   : > { %v781_v37 = vpop.f32.mrf.mxu3 }
 0x111   : > { %v2945_v14 = vadd.f32 %v781_v37, %v717_v22  ;;  %v1198_v22 = vld [vmem:[%s2632_s14 + $0x80] sm:$0xff]  ;;  %v1292_v37 = vld [vmem:[%s2632_s14 + $0x370] sm:$0xff] }
 0x112   : > { %848 = vmatmul.f32.gmra.mxu0 %v2742_v28  ;;  %913 = vmatmul.f32.gmra.mxu1 %v2744_v29 }
 0x113   : > { %978 = vmatmul.f32.gmra.mxu2 %v2742_v28  ;;  %1317 = vmatpush.msra.mxu0 %v1198_v22 }
 0x114   : > { %1043 = vmatmul.f32.gmra.mxu3 %v2744_v29  ;;  %v1264_v29 = vld [vmem:[%s2632_s14 + $0x290] sm:$0xff] }
 0x115   : > { %1446 = vmatpush.msra.mxu2 %v1264_v29  ;;  %1513 = vmatpush.msra.mxu3 %v1292_v37  ;;  %v1290_v29 = vld [vmem:[%s2632_s14 + $0x360] sm:$0xff] }
 0x116   : > { %v719_v43 = vpop.f32.mrf.mxu2  ;;  %1318 = vmatpush.msra.mxu0 %v1196_v51 }
 0x117   : > { %v720_v44 = vadd.f32 %v719_v43, %v2918_v2  ;;  %v2954_v45 = vpop.f32.mrf.mxu0  ;;  %v2956_v46 = vpop.f32.mrf.mxu1  ;;  %1514 = vmatpush.msra.mxu3 %v1290_v29 }
 0x118   : > { %v784_v55 = vpop.f32.mrf.mxu3  ;;  %1319 = vmatpush.msra.mxu0 %v1194_v8 }
 0x119   : > { %v2960_v28 = vadd.f32 %v784_v55, %v720_v44  ;;  %1515 = vmatpush.msra.mxu3 %v1288_v0 }
 0x11a   : > { %851 = vmatmul.f32.gmra.mxu0 %v2755_v35  ;;  %916 = vmatmul.f32.gmra.mxu1 %v2757_v36 }
 0x11b   : > { %981 = vmatmul.f32.gmra.mxu2 %v2755_v35 }
 0x11c   : > { %1046 = vmatmul.f32.gmra.mxu3 %v2757_v36  ;;  %v1262_v36 = vld [vmem:[%s2632_s14 + $0x280] sm:$0xff] }
 0x11d   : > { %1447 = vmatpush.msra.mxu2 %v1262_v36 }
 0x11e   : > { %v722_v61 = vpop.f32.mrf.mxu2 }
 0x11f   : > { %v723_v62 = vadd.f32 %v722_v61, %v2918_v2  ;;  %v2969_v5 = vpop.f32.mrf.mxu0  ;;  %v2971_v6 = vpop.f32.mrf.mxu1 }
 0x120   : > { %v787_v13 = vpop.f32.mrf.mxu3 }
 0x121   : > { %v2975_v35 = vadd.f32 %v787_v13, %v723_v62  ;;  %v1226_v13 = vld [vmem:[%s2632_s14 + $0x160] sm:$0xff] }
 0x122   : > { %854 = vmatmul.f32.gmra.mxu0 %v2767_v41  ;;  %919 = vmatmul.f32.gmra.mxu1 %v2769_v42 }
 0x123   : > { %984 = vmatmul.f32.gmra.mxu2 %v2767_v41  ;;  %1384 = vmatpush.msra.mxu1 %v1226_v13  ;;  %v1188_v13 = vld [vmem:[%s2632_s14 + $0x30] sm:$0xff] }
 0x124   : > { %1049 = vmatmul.f32.gmra.mxu3 %v2769_v42  ;;  %v1260_v42 = vld [vmem:[%s2632_s14 + $0x270] sm:$0xff] }
 0x125   : > { %1448 = vmatpush.msra.mxu2 %v1260_v42  ;;  %v1224_v42 = vld [vmem:[%s2632_s14 + $0x150] sm:$0xff] }
 0x126   : > { %v725_v16 = vpop.f32.mrf.mxu2  ;;  %1385 = vmatpush.msra.mxu1 %v1224_v42  ;;  %v1218_v42 = vld [vmem:[%s2632_s14 + $0x120] sm:$0xff] }
 0x127   : > { %v726_v19 = vadd.f32 %v725_v16, %v2918_v2  ;;  %v2984_v20 = vpop.f32.mrf.mxu0  ;;  %v2986_v21 = vpop.f32.mrf.mxu1 }
 0x128   : > { %v790_v32 = vpop.f32.mrf.mxu3 }
 0x129   : > { %v2990_v41 = vadd.f32 %v790_v32, %v726_v19  ;;  %v1192_v32 = vld [vmem:[%s2632_s14 + $0x50] sm:$0xff] }
 0x12a   : > { %857 = vmatmul.f32.gmra.mxu0 %v2779_v47  ;;  %922 = vmatmul.f32.gmra.mxu1 %v2781_v48 }
 0x12b   : > { %987 = vmatmul.f32.gmra.mxu2 %v2779_v47  ;;  %1320 = vmatpush.msra.mxu0 %v1192_v32  ;;  %v1186_v32 = vld [vmem:[%s2632_s14 + $0x20] sm:$0xff] }
 0x12c   : > { %1052 = vmatmul.f32.gmra.mxu3 %v2781_v48  ;;  %v1258_v48 = vld [vmem:[%s2632_s14 + $0x260] sm:$0xff] }
 0x12d   : > { %1449 = vmatpush.msra.mxu2 %v1258_v48  ;;  %v1222_v48 = vld [vmem:[%s2632_s14 + $0x140] sm:$0xff] }
 0x12e   : > { %v728_v15 = vpop.f32.mrf.mxu2  ;;  %1386 = vmatpush.msra.mxu1 %v1222_v48  ;;  %v1184_v48 = vld [vmem:[%s2632_s14 + $0x10] sm:$0xff] }
 0x12f   : > { %v729_v38 = vadd.f32 %v728_v15, %v2918_v2  ;;  %v2999_v43 = vpop.f32.mrf.mxu0  ;;  %v3001_v44 = vpop.f32.mrf.mxu1  ;;  %v1286_v15 = vld [vmem:[%s2632_s14 + $0x340] sm:$0xff] }
 0x130   : > { %v793_v55 = vpop.f32.mrf.mxu3  ;;  %1516 = vmatpush.msra.mxu3 %v1286_v15 }
 0x131   : > { %v3005_v47 = vadd.f32 %v793_v55, %v729_v38  ;;  %v1190_v55 = vld [vmem:[%s2632_s14 + $0x40] sm:$0xff] }
 0x132   : > { %860 = vmatmul.f32.gmra.mxu0 %v2791_v53  ;;  %925 = vmatmul.f32.gmra.mxu1 %v2793_v54 }
 0x133   : > { %990 = vmatmul.f32.gmra.mxu2 %v2791_v53  ;;  %1321 = vmatpush.msra.mxu0 %v1190_v55 }
 0x134   : > { %1055 = vmatmul.f32.gmra.mxu3 %v2793_v54  ;;  %v1256_v54 = vld [vmem:[%s2632_s14 + $0x250] sm:$0xff] }
 0x135   : > { %1450 = vmatpush.msra.mxu2 %v1256_v54  ;;  %1322 = vmatpush.msra.mxu0 %v1188_v13  ;;  %v1246_v13 = vld [vmem:[%s2632_s14 + $0x200] sm:$0xff] }
 0x136   : > { %v731_v56 = vpop.f32.mrf.mxu2 }
 0x137   : > { %v732_v61 = vadd.f32 %v731_v56, %v2918_v2  ;;  %v3014_v62 = vpop.f32.mrf.mxu0  ;;  %v3016_v7 = vpop.f32.mrf.mxu1  ;;  %1323 = vmatpush.msra.mxu0 %v1186_v32 }
 0x138   : > { %v796_v36 = vpop.f32.mrf.mxu3 }
 0x139   : > { %v3020_v53 = vadd.f32 %v796_v36, %v732_v61  ;;  %v1220_v36 = vld [vmem:[%s2632_s14 + $0x130] sm:$0xff]  ;;  %1324 = vmatpush.msra.mxu0 %v1184_v48 }
 0x13a   : > { %863 = vmatmul.f32.gmra.mxu0 %v2803_v59  ;;  %928 = vmatmul.f32.gmra.mxu1 %v2805_v60 }
 0x13b   : > { %993 = vmatmul.f32.gmra.mxu2 %v2803_v59  ;;  %1387 = vmatpush.msra.mxu1 %v1220_v36  ;;  %v1278_v36 = vld [vmem:[%s2632_s14 + $0x300] sm:$0xff] }
 0x13c   : > { %1058 = vmatmul.f32.gmra.mxu3 %v2805_v60  ;;  %v1254_v60 = vld [vmem:[%s2632_s14 + $0x240] sm:$0xff] }
 0x13d   : > { %1451 = vmatpush.msra.mxu2 %v1254_v60  ;;  %1388 = vmatpush.msra.mxu1 %v1218_v42 }
 0x13e   : > { %v734_v16 = vpop.f32.mrf.mxu2 }
 0x13f   : > { %v735_v19 = vadd.f32 %v734_v16, %v2918_v2  ;;  %v3029_v22 = vpop.f32.mrf.mxu0  ;;  %v3031_v27 = vpop.f32.mrf.mxu1 }
 0x140   : > { %v799_v37 = vpop.f32.mrf.mxu3 }
 0x141   : > { %v3035_v59 = vadd.f32 %v799_v37, %v735_v19 }
 0x142   : > { %866 = vmatmul.f32.gmra.mxu0 %v2815_v3  ;;  %931 = vmatmul.f32.gmra.mxu1 %v2817_v4 }
 0x143   : > { %996 = vmatmul.f32.gmra.mxu2 %v2815_v3  ;;  %v1252_v3 = vld [vmem:[%s2632_s14 + $0x230] sm:$0xff] }
 0x144   : > { %1061 = vmatmul.f32.gmra.mxu3 %v2817_v4  ;;  %v1284_v4 = vld [vmem:[%s2632_s14 + $0x330] sm:$0xff]  ;;  %1452 = vmatpush.msra.mxu2 %v1252_v3 }
 0x145   : > { %1517 = vmatpush.msra.mxu3 %v1284_v4  ;;  %v1216_v3 = vld [vmem:[%s2632_s14 + $0x110] sm:$0xff] }
 0x146   : > { %v3043_v38 = vpop.f32.mrf.mxu2  ;;  %1389 = vmatpush.msra.mxu1 %v1216_v3  ;;  %v1213_v3 = vld [vmem:[%s2632_s14 + $0xf8] sm:$0xff] }
 0x147   : > { %v3045_v51 = vpop.f32.mrf.mxu0  ;;  %v3047_v52 = vpop.f32.mrf.mxu1 }
 0x148   : > { %v3051_v29 = vpop.f32.mrf.mxu3 }
 0x14a   : > { %869 = vmatmul.f32.gmra.mxu0 %v2827_v9  ;;  %934 = vmatmul.f32.gmra.mxu1 %v2829_v10 }
 0x14b   : > { %999 = vmatmul.f32.gmra.mxu2 %v2827_v9  ;;  %v1250_v9 = vld [vmem:[%s2632_s14 + $0x220] sm:$0xff] }
 0x14c   : > { %1064 = vmatmul.f32.gmra.mxu3 %v2829_v10  ;;  %v1282_v10 = vld [vmem:[%s2632_s14 + $0x320] sm:$0xff]  ;;  %1453 = vmatpush.msra.mxu2 %v1250_v9 }
 0x14d   : > { %1518 = vmatpush.msra.mxu3 %v1282_v10 }
 0x14e   : > { %v3059_v56 = vpop.f32.mrf.mxu2 }
 0x14f   : > { %v3061_v61 = vpop.f32.mrf.mxu0  ;;  %v3063_v8 = vpop.f32.mrf.mxu1 }
 0x150   : > { %v3067_v54 = vpop.f32.mrf.mxu3 }
 0x152   : > { %872 = vmatmul.f32.gmra.mxu0 %v2839_v17  ;;  %937 = vmatmul.f32.gmra.mxu1 %v2841_v18 }
 0x153   : > { %1002 = vmatmul.f32.gmra.mxu2 %v2839_v17  ;;  %v1248_v17 = vld [vmem:[%s2632_s14 + $0x210] sm:$0xff] }
 0x154   : > { %1067 = vmatmul.f32.gmra.mxu3 %v2841_v18  ;;  %v1280_v18 = vld [vmem:[%s2632_s14 + $0x310] sm:$0xff]  ;;  %1454 = vmatpush.msra.mxu2 %v1248_v17 }
 0x155   : > { %1519 = vmatpush.msra.mxu3 %v1280_v18 }
 0x156   : > { %v3075_v0 = vpop.f32.mrf.mxu2  ;;  %1455 = vmatpush.msra.mxu2 %v1246_v13  ;;  %v1307_v13 = vld [vmem:[%s2632_s14 + $0x3e8] sm:$0xff] }
 0x157   : > { %v3077_v16 = vpop.f32.mrf.mxu0  ;;  %v3079_v19 = vpop.f32.mrf.mxu1  ;;  %1520 = vmatpush.msra.mxu3 %v1278_v36 }
 0x158   : > { %v3083_v37 = vpop.f32.mrf.mxu3 }
 0x15a   : > { %875 = vmatmul.f32.gmra.mxu0 %v2851_v23  ;;  %940 = vmatmul.f32.gmra.mxu1 %v2853_v24 }
 0x15b   : > { %1005 = vmatmul.f32.gmra.mxu2 %v2851_v23  ;;  %v1182_v23 = vld [vmem:[%s2632_s14] sm:$0xff] }
 0x15c   : > { %1070 = vmatmul.f32.gmra.mxu3 %v2853_v24  ;;  %v1214_v24 = vld [vmem:[%s2632_s14 + $0x100] sm:$0xff]  ;;  %1325 = vmatpush.msra.mxu0 %v1182_v23  ;;  %v1245_v23 = vld [vmem:[%s2632_s14 + $0x1f8] sm:$0xff] }
 0x15d   : > { %1390 = vmatpush.msra.mxu1 %v1214_v24 }
 0x15e   : > { %v3091_v60 = vpop.f32.mrf.mxu2  ;;  %1570 = vmatpush.msrb.mxu0 %v1213_v3  ;;  %v1211_v3 = vld [vmem:[%s2632_s14 + $0xe8] sm:$0xff] }
 0x15f   : > { %v3093_v15 = vpop.f32.mrf.mxu0  ;;  %v3095_v55 = vpop.f32.mrf.mxu1  ;;  %1635 = vmatpush.msrb.mxu1 %v1245_v23  ;;  %v1243_v23 = vld [vmem:[%s2632_s14 + $0x1e8] sm:$0xff] }
 0x160   : > { %v3099_v4 = vpop.f32.mrf.mxu3  ;;  %1571 = vmatpush.msrb.mxu0 %v1211_v3 }
 0x161   : > { %1636 = vmatpush.msrb.mxu1 %v1243_v23 }
 0x162   : > { %878 = vmatmul.f32.gmra.mxu0 %v2862_v30  ;;  %943 = vmatmul.f32.gmra.mxu1 %v2864_v31 }
 0x163   : > { %1008 = vmatmul.f32.gmra.mxu2 %v2862_v30  ;;  %v1277_v30 = vld [vmem:[%s2632_s14 + $0x2f8] sm:$0xff] }
 0x164   : > { %1073 = vmatmul.f32.gmra.mxu3 %v2864_v31  ;;  %1700 = vmatpush.msrb.mxu2 %v1277_v30  ;;  %v1309_v31 = vld [vmem:[%s2632_s14 + $0x3f8] sm:$0xff] }
 0x165   : > { %1765 = vmatpush.msrb.mxu3 %v1309_v31 }
 0x166   : > { %v3109_v9 = vpop.f32.mrf.mxu2 }
 0x167   : > { %v3111_v10 = vpop.f32.mrf.mxu0  ;;  %v3113_v32 = vpop.f32.mrf.mxu1  ;;  %1766 = vmatpush.msrb.mxu3 %v1307_v13  ;;  %v1305_v13 = vld [vmem:[%s2632_s14 + $0x3d8] sm:$0xff] }
 0x168   : > { %v3115_v42 = vpop.f32.mrf.mxu3 }
 0x169   : > { %1767 = vmatpush.msrb.mxu3 %v1305_v13 }
 0x16a   : > { %881 = vmatmul.f32.gmra.mxu0 %v2871_v33  ;;  %946 = vmatmul.f32.gmra.mxu1 %v2873_v34 }
 0x16b   : > { %1011 = vmatmul.f32.gmra.mxu2 %v2871_v33  ;;  %v3137_v33 = vperm.slane %v2912_v63, 0 }
 0x16c   : > { %1076 = vmatmul.f32.gmra.mxu3 %v2873_v34  ;;  %v1275_v34 = vld [vmem:[%s2632_s14 + $0x2e8] sm:$0xff] }
 0x16d   : > { %1701 = vmatpush.msrb.mxu2 %v1275_v34  ;;  %v3162_v34 = vperm.slane %v2912_v63, 2 }
 0x16e   : > { %v3123_v17 = vpop.f32.mrf.mxu2 }
 0x16f   : > { %v3125_v18 = vpop.f32.mrf.mxu0  ;;  %v3127_v48 = vpop.f32.mrf.mxu1 }
 0x170   : > { %3925 = vst [vmem:[#allocation21_spill] sm:$0xff] %v3127_v48  ;;  %v3131_v24 = vpop.f32.mrf.mxu3 }
 0x172   : > { %884 = vmatmul.f32.gmra.mxu0 %v2881_v39  ;;  %949 = vmatmul.f32.gmra.mxu1 %v2883_v40 }
 0x173   : > { %1014 = vmatmul.f32.gmra.mxu2 %v2881_v39  ;;  %v584_v39 = vadd.f32 %v2905_v57, %v3137_v33  ;;  %v1273_v57 = vld [vmem:[%s2632_s14 + $0x2d8] sm:$0xff] }
 0x174   : > { %1079 = vmatmul.f32.gmra.mxu3 %v2883_v40  ;;  %1702 = vmatpush.msrb.mxu2 %v1273_v57 }
 0x175   : > { %v3158_v40 = vadd.f32 %v2907_v58, %v584_v39  ;;  %v3831_v58 = vmax.f32 %v2930_v1, 0.0  ;;  %v1207_v1 = vld [vmem:[%s2632_s14 + $0xc8] sm:$0xff] }
 0x176   : > { %v3142_v36 = vpop.f32.mrf.mxu2 }
 0x177   : > { %v3144_v30 = vpop.f32.mrf.mxu0  ;;  %v3146_v31 = vpop.f32.mrf.mxu1  ;;  %3929 = vst [vmem:[#allocation25_spill] sm:$0xff] %v3158_v40 }
 0x178   : > { %3926 = vst [vmem:[#allocation22_spill] sm:$0xff] %v3144_v30  ;;  %v3152_v48 = vpop.f32.mrf.mxu3  ;;  %v1209_v30 = vld [vmem:[%s2632_s14 + $0xd8] sm:$0xff] }
 0x179   : > { %3927 = vst [vmem:[#allocation23_spill] sm:$0xff] %v3146_v31  ;;  %1572 = vmatpush.msrb.mxu0 %v1209_v30  ;;  %v1271_v30 = vld [vmem:[%s2632_s14 + $0x2c8] sm:$0xff] }
 0x17a   : > { %3928 = vst [vmem:[#allocation24_spill] sm:$0xff] %v3152_v48  ;;  %887 = vmatmul.f32.gmra.mxu0 %v2893_v49  ;;  %952 = vmatmul.f32.gmra.mxu1 %v2895_v50  ;;  %v1241_v48 = vld [vmem:[%s2632_s14 + $0x1d8] sm:$0xff] }
 0x17b   : > { %1017 = vmatmul.f32.gmra.mxu2 %v2893_v49  ;;  %v3830_v49 = vmax.f32 %v3158_v40, 0.0  ;;  %1637 = vmatpush.msrb.mxu1 %v1241_v48  ;;  %v1303_v48 = vld [vmem:[%s2632_s14 + $0x3c8] sm:$0xff] }
 0x17c   : > { %1082 = vmatmul.f32.gmra.mxu3 %v2895_v50  ;;  %v587_v50 = vadd.f32 %v2924_v11, %v3137_v33  ;;  %v3184_v11 = vperm.slane %v2912_v63, 3  ;;  %1703 = vmatpush.msrb.mxu2 %v1271_v30  ;;  %v1239_v63 = vld [vmem:[%s2632_s14 + $0x1c8] sm:$0xff]  ;;  %v3836_v30 = vmax.f32 %v2945_v14, 0.0 }
 0x17d   : > { %1768 = vmatpush.msrb.mxu3 %v1303_v48  ;;  %1573 = vmatpush.msrb.mxu0 %v1207_v1 }
 0x17e   : > { %v3166_v3 = vpop.f32.mrf.mxu2  ;;  %1638 = vmatpush.msrb.mxu1 %v1239_v63 }
 0x17f   : > { %3930 = vst [vmem:[#allocation26_spill] sm:$0xff] %v3166_v3  ;;  %v843_v23 = vpop.f32.mrf.mxu0  ;;  %v908_v31 = vpop.f32.mrf.mxu1  ;;  %v3187_v3 = vadd.f32 %v2926_v12, %v587_v50  ;;  %v590_v50 = vadd.f32 %v2939_v25, %v3137_v33 }
 0x180   : > { %v3174_v39 = vpop.f32.mrf.mxu3  ;;  %v844_v57 = vadd.f32 %v843_v23, %v3162_v34 }
 0x181   : > { %v3837_v12 = vmax.f32 %v3187_v3, 0.0 }
 0x182   : > { %v3177_v13 = vadd.f32 %v908_v31, %v844_v57  ;;  %1326 = vmatmul.f32.vlgmr.msra.gmra.mxu0 %v3830_v49  ;;  %1391 = vmatmul.f32.vlgmr.msra.gmra.mxu1 %v3831_v58 }
 0x184   : > { %3931 = vst [vmem:[#allocation27_spill] sm:$0xff] %v3177_v13  ;;  %v3835_v23 = vmax.f32 %v3177_v13, 0.0 }
 0x186   : > { %v973_v31 = vpop.f32.mrf.mxu2  ;;  %1456 = vmatmul.f32.vlgmr.msra.gmra.mxu2 %v3835_v23  ;;  %v3212_v23 = vadd.f32 %v2941_v26, %v590_v50  ;;  %v1237_v26 = vld [vmem:[%s2632_s14 + $0x1b8] sm:$0xff] }
 0x187   : > { %v974_v57 = vadd.f32 %v973_v31, %v3184_v11  ;;  %v846_v49 = vpop.f32.mrf.mxu0  ;;  %v911_v58 = vpop.f32.mrf.mxu1  ;;  %1639 = vmatpush.msrb.mxu1 %v1237_v26 }
 0x188   : > { %v847_v40 = vadd.f32 %v846_v49, %v3162_v34  ;;  %v1038_v13 = vpop.f32.mrf.mxu3  ;;  %v1269_v49 = vld [vmem:[%s2632_s14 + $0x2b8] sm:$0xff]  ;;  %v3842_v50 = vmax.f32 %v3212_v23, 0.0 }
 0x189   : > { %v3202_v48 = vadd.f32 %v1038_v13, %v974_v57  ;;  %1704 = vmatpush.msrb.mxu2 %v1269_v49  ;;  %v3841_v49 = vmax.f32 %v2960_v28, 0.0 }
 0x18a   : > { %v3204_v31 = vadd.f32 %v911_v58, %v847_v40  ;;  %1329 = vmatmul.f32.gmra.mxu0 %v3837_v12  ;;  %1394 = vmatmul.f32.gmra.mxu1 %v3836_v30  ;;  %v1301_v40 = vld [vmem:[%s2632_s14 + $0x3b8] sm:$0xff]  ;;  %v593_v12 = vadd.f32 %v2954_v45, %v3137_v33 }
 0x18b   : > { %v3838_v25 = vmax.f32 %v3202_v48, 0.0  ;;  %1769 = vmatpush.msrb.mxu3 %v1301_v40  ;;  %v1205_v30 = vld [vmem:[%s2632_s14 + $0xb8] sm:$0xff] }
 0x18c   : > { %3932 = vst [vmem:[#allocation28_spill] sm:$0xff] %v3204_v31  ;;  %v3840_v1 = vmax.f32 %v3204_v31, 0.0  ;;  %1574 = vmatpush.msrb.mxu0 %v1205_v30 }
 0x18d   : > { %1521 = vmatmul.f32.vlgmr.msra.gmra.mxu3 %v3838_v25 }
 0x18e   : > { %v976_v58 = vpop.f32.mrf.mxu2  ;;  %1459 = vmatmul.f32.gmra.mxu2 %v3840_v1  ;;  %v3239_v1 = vadd.f32 %v2956_v46, %v593_v12  ;;  %v1235_v46 = vld [vmem:[%s2632_s14 + $0x1a8] sm:$0xff] }
 0x18f   : > { %v977_v13 = vadd.f32 %v976_v58, %v3184_v11  ;;  %v849_v57 = vpop.f32.mrf.mxu0  ;;  %v914_v63 = vpop.f32.mrf.mxu1  ;;  %1640 = vmatpush.msrb.mxu1 %v1235_v46 }
 0x190   : > { %v850_v25 = vadd.f32 %v849_v57, %v3162_v34  ;;  %v1041_v31 = vpop.f32.mrf.mxu3  ;;  %v1267_v57 = vld [vmem:[%s2632_s14 + $0x2a8] sm:$0xff]  ;;  %v3847_v12 = vmax.f32 %v3239_v1, 0.0 }
 0x191   : > { %v3229_v40 = vadd.f32 %v1041_v31, %v977_v13  ;;  %1705 = vmatpush.msrb.mxu2 %v1267_v57  ;;  %v1299_v31 = vld [vmem:[%s2632_s14 + $0x3a8] sm:$0xff]  ;;  %v3846_v57 = vmax.f32 %v2975_v35, 0.0 }
 0x192   : > { %v3231_v58 = vadd.f32 %v914_v63, %v850_v25  ;;  %1332 = vmatmul.f32.gmra.mxu0 %v3842_v50  ;;  %1397 = vmatmul.f32.gmra.mxu1 %v3841_v49  ;;  %v1203_v49 = vld [vmem:[%s2632_s14 + $0xa8] sm:$0xff]  ;;  %v596_v50 = vadd.f32 %v2969_v5, %v3137_v33 }
 0x193   : > { %v3843_v45 = vmax.f32 %v3229_v40, 0.0  ;;  %1770 = vmatpush.msrb.mxu3 %v1299_v31  ;;  %1575 = vmatpush.msrb.mxu0 %v1203_v49 }
 0x194   : > { %3933 = vst [vmem:[#allocation29_spill] sm:$0xff] %v3231_v58  ;;  %v3845_v30 = vmax.f32 %v3231_v58, 0.0 }
 0x195   : > { %1524 = vmatmul.f32.gmra.mxu3 %v3843_v45 }
 0x196   : > { %v979_v25 = vpop.f32.mrf.mxu2  ;;  %1462 = vmatmul.f32.gmra.mxu2 %v3845_v30  ;;  %v3266_v30 = vadd.f32 %v2971_v6, %v596_v50  ;;  %v1233_v6 = vld [vmem:[%s2632_s14 + $0x198] sm:$0xff] }
 0x197   : > { %v980_v13 = vadd.f32 %v979_v25, %v3184_v11  ;;  %v852_v63 = vpop.f32.mrf.mxu0  ;;  %v917_v26 = vpop.f32.mrf.mxu1  ;;  %1641 = vmatpush.msrb.mxu1 %v1233_v6 }
 0x198   : > { %v853_v45 = vadd.f32 %v852_v63, %v3162_v34  ;;  %v1044_v58 = vpop.f32.mrf.mxu3  ;;  %v1265_v63 = vld [vmem:[%s2632_s14 + $0x298] sm:$0xff]  ;;  %v3852_v50 = vmax.f32 %v3266_v30, 0.0 }
 0x199   : > { %v3256_v31 = vadd.f32 %v1044_v58, %v980_v13  ;;  %1706 = vmatpush.msrb.mxu2 %v1265_v63  ;;  %v1297_v58 = vld [vmem:[%s2632_s14 + $0x398] sm:$0xff]  ;;  %v3851_v63 = vmax.f32 %v2990_v41, 0.0 }
 0x19a   : > { %v3258_v25 = vadd.f32 %v917_v26, %v853_v45  ;;  %1335 = vmatmul.f32.gmra.mxu0 %v3847_v12  ;;  %1400 = vmatmul.f32.gmra.mxu1 %v3846_v57  ;;  %v1201_v57 = vld [vmem:[%s2632_s14 + $0x98] sm:$0xff]  ;;  %v599_v12 = vadd.f32 %v2984_v20, %v3137_v33 }
 0x19b   : > { %v3848_v5 = vmax.f32 %v3256_v31, 0.0  ;;  %1771 = vmatpush.msrb.mxu3 %v1297_v58  ;;  %1576 = vmatpush.msrb.mxu0 %v1201_v57 }
 0x19c   : > { %3934 = vst [vmem:[#allocation30_spill] sm:$0xff] %v3258_v25  ;;  %v3850_v49 = vmax.f32 %v3258_v25, 0.0 }
 0x19d   : > { %1527 = vmatmul.f32.gmra.mxu3 %v3848_v5 }
 0x19e   : > { %v982_v45 = vpop.f32.mrf.mxu2  ;;  %1465 = vmatmul.f32.gmra.mxu2 %v3850_v49  ;;  %v3293_v49 = vadd.f32 %v2986_v21, %v599_v12  ;;  %v1231_v21 = vld [vmem:[%s2632_s14 + $0x188] sm:$0xff] }
 0x19f   : > { %v983_v13 = vadd.f32 %v982_v45, %v3184_v11  ;;  %v855_v26 = vpop.f32.mrf.mxu0  ;;  %v920_v46 = vpop.f32.mrf.mxu1  ;;  %1642 = vmatpush.msrb.mxu1 %v1231_v21 }
 0x1a0   : > { %v856_v5 = vadd.f32 %v855_v26, %v3162_v34  ;;  %v1047_v25 = vpop.f32.mrf.mxu3  ;;  %v1263_v26 = vld [vmem:[%s2632_s14 + $0x288] sm:$0xff]  ;;  %v3857_v12 = vmax.f32 %v3293_v49, 0.0 }
 0x1a1   : > { %v3283_v58 = vadd.f32 %v1047_v25, %v983_v13  ;;  %1707 = vmatpush.msrb.mxu2 %v1263_v26  ;;  %v1295_v25 = vld [vmem:[%s2632_s14 + $0x388] sm:$0xff]  ;;  %v3856_v26 = vmax.f32 %v3005_v47, 0.0 }
 0x1a2   : > { %v3285_v45 = vadd.f32 %v920_v46, %v856_v5  ;;  %1338 = vmatmul.f32.gmra.mxu0 %v3852_v50  ;;  %1403 = vmatmul.f32.gmra.mxu1 %v3851_v63  ;;  %v1199_v63 = vld [vmem:[%s2632_s14 + $0x88] sm:$0xff]  ;;  %v602_v50 = vadd.f32 %v2999_v43, %v3137_v33 }
 0x1a3   : > { %v3853_v20 = vmax.f32 %v3283_v58, 0.0  ;;  %1772 = vmatpush.msrb.mxu3 %v1295_v25  ;;  %1577 = vmatpush.msrb.mxu0 %v1199_v63 }
 0x1a4   : > { %3935 = vst [vmem:[#allocation31_spill] sm:$0xff] %v3285_v45  ;;  %v3855_v57 = vmax.f32 %v3285_v45, 0.0 }
 0x1a5   : > { %1530 = vmatmul.f32.gmra.mxu3 %v3853_v20 }
 0x1a6   : > { %v985_v5 = vpop.f32.mrf.mxu2  ;;  %1468 = vmatmul.f32.gmra.mxu2 %v3855_v57  ;;  %v3320_v57 = vadd.f32 %v3001_v44, %v602_v50  ;;  %v1229_v44 = vld [vmem:[%s2632_s14 + $0x178] sm:$0xff] }
 0x1a7   : > { %v986_v13 = vadd.f32 %v985_v5, %v3184_v11  ;;  %v858_v46 = vpop.f32.mrf.mxu0  ;;  %v923_v6 = vpop.f32.mrf.mxu1  ;;  %1643 = vmatpush.msrb.mxu1 %v1229_v44  ;;  %v1195_v44 = vld [vmem:[%s2632_s14 + $0x68] sm:$0xff] }
 0x1a8   : > { %v859_v20 = vadd.f32 %v858_v46, %v3162_v34  ;;  %v1050_v45 = vpop.f32.mrf.mxu3  ;;  %v1261_v46 = vld [vmem:[%s2632_s14 + $0x278] sm:$0xff]  ;;  %v3862_v50 = vmax.f32 %v3320_v57, 0.0 }
 0x1a9   : > { %v3310_v25 = vadd.f32 %v1050_v45, %v986_v13  ;;  %1708 = vmatpush.msrb.mxu2 %v1261_v46  ;;  %v1293_v45 = vld [vmem:[%s2632_s14 + $0x378] sm:$0xff]  ;;  %v3861_v46 = vmax.f32 %v3020_v53, 0.0 }
 0x1aa   : > { %v3312_v5 = vadd.f32 %v923_v6, %v859_v20  ;;  %1341 = vmatmul.f32.gmra.mxu0 %v3857_v12  ;;  %1406 = vmatmul.f32.gmra.mxu1 %v3856_v26  ;;  %v1197_v26 = vld [vmem:[%s2632_s14 + $0x78] sm:$0xff]  ;;  %v605_v12 = vadd.f32 %v3014_v62, %v3137_v33 }
 0x1ab   : > { %v3858_v43 = vmax.f32 %v3310_v25, 0.0  ;;  %1773 = vmatpush.msrb.mxu3 %v1293_v45  ;;  %1578 = vmatpush.msrb.mxu0 %v1197_v26 }
 0x1ac   : > { %3936 = vst [vmem:[#allocation32_spill] sm:$0xff] %v3312_v5  ;;  %v3860_v63 = vmax.f32 %v3312_v5, 0.0 }
 0x1ad   : > { %1533 = vmatmul.f32.gmra.mxu3 %v3858_v43  ;;  %1579 = vmatpush.msrb.mxu0 %v1195_v44 }
 0x1ae   : > { %v988_v20 = vpop.f32.mrf.mxu2  ;;  %1471 = vmatmul.f32.gmra.mxu2 %v3860_v63  ;;  %v3347_v63 = vadd.f32 %v3016_v7, %v605_v12 }
 0x1af   : > { %v989_v13 = vadd.f32 %v988_v20, %v3184_v11  ;;  %v861_v6 = vpop.f32.mrf.mxu0  ;;  %v926_v21 = vpop.f32.mrf.mxu1 }
 0x1b0   : > { %v862_v43 = vadd.f32 %v861_v6, %v3162_v34  ;;  %v1053_v5 = vpop.f32.mrf.mxu3  ;;  %v1259_v6 = vld [vmem:[%s2632_s14 + $0x268] sm:$0xff] }
 0x1b1   : > { %v3337_v45 = vadd.f32 %v1053_v5, %v989_v13  ;;  %1709 = vmatpush.msrb.mxu2 %v1259_v6  ;;  %v1291_v5 = vld [vmem:[%s2632_s14 + $0x368] sm:$0xff]  ;;  %v608_v13 = vadd.f32 %v3029_v22, %v3137_v33  ;;  %v3866_v6 = vmax.f32 %v3035_v59, 0.0 }
 0x1b2   : > { %v3339_v20 = vadd.f32 %v926_v21, %v862_v43  ;;  %1344 = vmatmul.f32.gmra.mxu0 %v3862_v50  ;;  %1409 = vmatmul.f32.gmra.mxu1 %v3861_v46  ;;  %v1227_v46 = vld [vmem:[%s2632_s14 + $0x168] sm:$0xff]  ;;  %v3869_v50 = vmax.f32 %v3347_v63, 0.0 }
 0x1b3   : > { %v3863_v62 = vmax.f32 %v3337_v45, 0.0  ;;  %1774 = vmatpush.msrb.mxu3 %v1291_v5  ;;  %1644 = vmatpush.msrb.mxu1 %v1227_v46 }
 0x1b4   : > { %3937 = vst [vmem:[#allocation33_spill] sm:$0xff] %v3339_v20  ;;  %v3864_v26 = vmax.f32 %v3339_v20, 0.0  ;;  %v3375_v20 = vadd.f32 %v3031_v27, %v608_v13 }
 0x1b5   : > { %1536 = vmatmul.f32.gmra.mxu3 %v3863_v62  ;;  %v738_v62 = vadd.f32 %v3043_v38, %v2918_v2 }
 0x1b6   : > { %v991_v43 = vpop.f32.mrf.mxu2  ;;  %1474 = vmatmul.f32.gmra.mxu2 %v3864_v26  ;;  %v3873_v27 = vmax.f32 %v3375_v20, 0.0 }
 0x1b7   : > { %v992_v21 = vadd.f32 %v991_v43, %v3184_v11  ;;  %v864_v7 = vpop.f32.mrf.mxu0  ;;  %v929_v12 = vpop.f32.mrf.mxu1 }
 0x1b8   : > { %v865_v5 = vadd.f32 %v864_v7, %v3162_v34  ;;  %v1056_v26 = vpop.f32.mrf.mxu3  ;;  %v3379_v7 = vadd.f32 %v3051_v29, %v738_v62  ;;  %v1193_v62 = vld [vmem:[%s2632_s14 + $0x58] sm:$0xff] }
 0x1b9   : > { %v3366_v22 = vadd.f32 %v1056_v26, %v992_v21  ;;  %v1257_v26 = vld [vmem:[%s2632_s14 + $0x258] sm:$0xff]  ;;  %1580 = vmatpush.msrb.mxu0 %v1193_v62 }
 0x1ba   : > { %v3368_v43 = vadd.f32 %v929_v12, %v865_v5  ;;  %1347 = vmatmul.f32.gmra.mxu0 %v3869_v50  ;;  %1412 = vmatmul.f32.gmra.mxu1 %v3866_v6  ;;  %v1289_v21 = vld [vmem:[%s2632_s14 + $0x358] sm:$0xff]  ;;  %v611_v6 = vadd.f32 %v3045_v51, %v3137_v33 }
 0x1bb   : > { %v3867_v38 = vmax.f32 %v3366_v22, 0.0  ;;  %1710 = vmatpush.msrb.mxu2 %v1257_v26  ;;  %1775 = vmatpush.msrb.mxu3 %v1289_v21  ;;  %v1225_v5 = vld [vmem:[%s2632_s14 + $0x158] sm:$0xff]  ;;  %v3870_v26 = vmax.f32 %v3379_v7, 0.0 }
 0x1bc   : > { %v3868_v46 = vmax.f32 %v3368_v43, 0.0  ;;  %1645 = vmatpush.msrb.mxu1 %v1225_v5  ;;  %v1191_v5 = vld [vmem:[%s2632_s14 + $0x48] sm:$0xff] }
 0x1bd   : > { %1539 = vmatmul.f32.gmra.mxu3 %v3867_v38  ;;  %v741_v38 = vadd.f32 %v3059_v56, %v2918_v2  ;;  %v3408_v56 = vadd.f32 %v3047_v52, %v611_v6  ;;  %v614_v52 = vadd.f32 %v3061_v61, %v3137_v33  ;;  %1581 = vmatpush.msrb.mxu0 %v1191_v5 }
 0x1be   : > { %v994_v12 = vpop.f32.mrf.mxu2  ;;  %1477 = vmatmul.f32.gmra.mxu2 %v3868_v46 }
 0x1bf   : > { %v995_v13 = vadd.f32 %v994_v12, %v3184_v11  ;;  %v867_v44 = vpop.f32.mrf.mxu0  ;;  %v932_v29 = vpop.f32.mrf.mxu1 }
 0x1c0   : > { %v868_v21 = vadd.f32 %v867_v44, %v3162_v34  ;;  %v1059_v46 = vpop.f32.mrf.mxu3  ;;  %v3411_v44 = vadd.f32 %v3067_v54, %v741_v38 }
 0x1c1   : > { %v3398_v12 = vadd.f32 %v1059_v46, %v995_v13  ;;  %v1255_v13 = vld [vmem:[%s2632_s14 + $0x248] sm:$0xff] }
 0x1c2   : > { %v3400_v50 = vadd.f32 %v932_v29, %v868_v21  ;;  %1350 = vmatmul.f32.gmra.mxu0 %v3873_v27  ;;  %1415 = vmatmul.f32.gmra.mxu1 %v3870_v26  ;;  %v1287_v29 = vld [vmem:[%s2632_s14 + $0x348] sm:$0xff]  ;;  %v3877_v26 = vmax.f32 %v3408_v56, 0.0  ;;  %v3439_v27 = vadd.f32 %v3063_v8, %v614_v52 }
 0x1c3   : > { %v3871_v51 = vmax.f32 %v3398_v12, 0.0  ;;  %1711 = vmatpush.msrb.mxu2 %v1255_v13  ;;  %1776 = vmatpush.msrb.mxu3 %v1287_v29  ;;  %v1223_v21 = vld [vmem:[%s2632_s14 + $0x148] sm:$0xff]  ;;  %v3874_v13 = vmax.f32 %v3411_v44, 0.0 }
 0x1c4   : > { %v3872_v46 = vmax.f32 %v3400_v50, 0.0  ;;  %1646 = vmatpush.msrb.mxu1 %v1223_v21  ;;  %v3881_v8 = vmax.f32 %v3439_v27, 0.0 }
 0x1c5   : > { %1542 = vmatmul.f32.gmra.mxu3 %v3871_v51  ;;  %v744_v51 = vadd.f32 %v3075_v0, %v2918_v2 }
 0x1c6   : > { %v997_v62 = vpop.f32.mrf.mxu2  ;;  %1480 = vmatmul.f32.gmra.mxu2 %v3872_v46 }
 0x1c7   : > { %v998_v6 = vadd.f32 %v997_v62, %v3184_v11  ;;  %v870_v54 = vpop.f32.mrf.mxu0  ;;  %v935_v38 = vpop.f32.mrf.mxu1 }
 0x1c8   : > { %v871_v29 = vadd.f32 %v870_v54, %v3162_v34  ;;  %v1062_v46 = vpop.f32.mrf.mxu3  ;;  %v3443_v54 = vadd.f32 %v3083_v37, %v744_v51  ;;  %v1189_v51 = vld [vmem:[%s2632_s14 + $0x38] sm:$0xff] }
 0x1c9   : > { %v3430_v61 = vadd.f32 %v1062_v46, %v998_v6  ;;  %v1253_v6 = vld [vmem:[%s2632_s14 + $0x238] sm:$0xff]  ;;  %1582 = vmatpush.msrb.mxu0 %v1189_v51 }
 0x1ca   : > { %v3432_v62 = vadd.f32 %v935_v38, %v871_v29  ;;  %1353 = vmatmul.f32.gmra.mxu0 %v3877_v26  ;;  %1418 = vmatmul.f32.gmra.mxu1 %v3874_v13  ;;  %v1285_v38 = vld [vmem:[%s2632_s14 + $0x338] sm:$0xff]  ;;  %v617_v13 = vadd.f32 %v3077_v16, %v3137_v33 }
 0x1cb   : > { %v3875_v0 = vmax.f32 %v3430_v61, 0.0  ;;  %1712 = vmatpush.msrb.mxu2 %v1253_v6  ;;  %1777 = vmatpush.msrb.mxu3 %v1285_v38  ;;  %v1221_v29 = vld [vmem:[%s2632_s14 + $0x138] sm:$0xff]  ;;  %v3878_v6 = vmax.f32 %v3443_v54, 0.0 }
 0x1cc   : > { %v3876_v46 = vmax.f32 %v3432_v62, 0.0  ;;  %1647 = vmatpush.msrb.mxu1 %v1221_v29  ;;  %v1187_v29 = vld [vmem:[%s2632_s14 + $0x28] sm:$0xff] }
 0x1cd   : > { %1545 = vmatmul.f32.gmra.mxu3 %v3875_v0  ;;  %v747_v0 = vadd.f32 %v3091_v60, %v2918_v2  ;;  %v3472_v60 = vadd.f32 %v3079_v19, %v617_v13  ;;  %v620_v19 = vadd.f32 %v3093_v15, %v3137_v33  ;;  %1583 = vmatpush.msrb.mxu0 %v1187_v29 }
 0x1ce   : > { %v1000_v5 = vpop.f32.mrf.mxu2  ;;  %1483 = vmatmul.f32.gmra.mxu2 %v3876_v46 }
 0x1cf   : > { %v1001_v52 = vadd.f32 %v1000_v5, %v3184_v11  ;;  %v873_v21 = vpop.f32.mrf.mxu0  ;;  %v938_v37 = vpop.f32.mrf.mxu1 }
 0x1d0   : > { %v874_v38 = vadd.f32 %v873_v21, %v3162_v34  ;;  %v1065_v46 = vpop.f32.mrf.mxu3  ;;  %v3475_v21 = vadd.f32 %v3099_v4, %v747_v0 }
 0x1d1   : > { %v3462_v5 = vadd.f32 %v1065_v46, %v1001_v52  ;;  %v1251_v52 = vld [vmem:[%s2632_s14 + $0x228] sm:$0xff] }
 0x1d2   : > { %v3464_v26 = vadd.f32 %v938_v37, %v874_v38  ;;  %1356 = vmatmul.f32.gmra.mxu0 %v3881_v8  ;;  %1421 = vmatmul.f32.gmra.mxu1 %v3878_v6  ;;  %v1283_v37 = vld [vmem:[%s2632_s14 + $0x328] sm:$0xff]  ;;  %v3885_v6 = vmax.f32 %v3472_v60, 0.0  ;;  %v3503_v8 = vadd.f32 %v3095_v55, %v620_v19 }
 0x1d3   : > { %v3879_v16 = vmax.f32 %v3462_v5, 0.0  ;;  %1713 = vmatpush.msrb.mxu2 %v1251_v52  ;;  %1778 = vmatpush.msrb.mxu3 %v1283_v37  ;;  %v1219_v38 = vld [vmem:[%s2632_s14 + $0x128] sm:$0xff]  ;;  %v3884_v52 = vmax.f32 %v3475_v21, 0.0 }
 0x1d4   : > { %v3880_v46 = vmax.f32 %v3464_v26, 0.0  ;;  %1648 = vmatpush.msrb.mxu1 %v1219_v38  ;;  %v1185_v38 = vld [vmem:[%s2632_s14 + $0x18] sm:$0xff]  ;;  %v1215_v55 = vld [vmem:[%s2632_s14 + $0x108] sm:$0xff] }
 0x1d5   : > { %1548 = vmatmul.f32.gmra.mxu3 %v3879_v16  ;;  %v750_v16 = vadd.f32 %v3109_v9, %v2918_v2  ;;  %1584 = vmatpush.msrb.mxu0 %v1185_v38 }
 0x1d6   : > { %v1003_v51 = vpop.f32.mrf.mxu2  ;;  %1486 = vmatmul.f32.gmra.mxu2 %v3880_v46 }
 0x1d7   : > { %v1004_v13 = vadd.f32 %v1003_v51, %v3184_v11  ;;  %v876_v4 = vpop.f32.mrf.mxu0  ;;  %v941_v0 = vpop.f32.mrf.mxu1 }
 0x1d8   : > { %v877_v37 = vadd.f32 %v876_v4, %v3162_v34  ;;  %v1068_v46 = vpop.f32.mrf.mxu3  ;;  %v3507_v4 = vadd.f32 %v3115_v42, %v750_v16 }
 0x1d9   : > { %v3494_v15 = vadd.f32 %v1068_v46, %v1004_v13  ;;  %v1249_v13 = vld [vmem:[%s2632_s14 + $0x218] sm:$0xff] }
 0x1da   : > { %v3496_v51 = vadd.f32 %v941_v0, %v877_v37  ;;  %1359 = vmatmul.f32.gmra.mxu0 %v3885_v6  ;;  %1424 = vmatmul.f32.gmra.mxu1 %v3884_v52  ;;  %v1281_v0 = vld [vmem:[%s2632_s14 + $0x318] sm:$0xff]  ;;  %v1183_v6 = vld [vmem:[%s2632_s14 + $0x8] sm:$0xff] }
 0x1db   : > { %v3882_v9 = vmax.f32 %v3494_v15, 0.0  ;;  %1714 = vmatpush.msrb.mxu2 %v1249_v13  ;;  %1779 = vmatpush.msrb.mxu3 %v1281_v0  ;;  %v1217_v37 = vld [vmem:[%s2632_s14 + $0x118] sm:$0xff]  ;;  %v3889_v13 = vmax.f32 %v3507_v4, 0.0 }
 0x1dc   : > { %3938 = vst [vmem:[#allocation34_spill] sm:$0xff] %v3496_v51  ;;  %v3883_v46 = vmax.f32 %v3496_v51, 0.0  ;;  %1649 = vmatpush.msrb.mxu1 %v1217_v37  ;;  %1585 = vmatpush.msrb.mxu0 %v1183_v6  ;;  %v626_v6 = vadd.f32 %v3125_v18, %v3137_v33  ;;  %v3942_v18 = vld [vmem:[#allocation21_spill] sm:$0xff] }
 0x1dd   : > { %1551 = vmatmul.f32.gmra.mxu3 %v3882_v9  ;;  %v623_v9 = vadd.f32 %v3111_v10, %v3137_v33  ;;  %v3939_v10 = vmax.f32 %v3503_v8, 0.0 }
 0x1de   : > { %v1006_v29 = vpop.f32.mrf.mxu2  ;;  %1489 = vmatmul.f32.gmra.mxu2 %v3883_v46  ;;  %v753_v46 = vadd.f32 %v3123_v17, %v2918_v2  ;;  %1650 = vmatpush.msrb.mxu1 %v1215_v55 }
 0x1df   : > { %v1007_v42 = vadd.f32 %v1006_v29, %v3184_v11  ;;  %v879_v16 = vpop.f32.mrf.mxu0  ;;  %v944_v19 = vpop.f32.mrf.mxu1  ;;  %v3539_v38 = vadd.f32 %v3113_v32, %v623_v9 }
 0x1e0   : > { %v880_v0 = vadd.f32 %v879_v16, %v3162_v34  ;;  %v1071_v52 = vpop.f32.mrf.mxu3  ;;  %v1247_v16 = vld [vmem:[%s2632_s14 + $0x208] sm:$0xff] }
 0x1e1   : > { %v3526_v29 = vadd.f32 %v1071_v52, %v1007_v42  ;;  %v3542_v52 = vadd.f32 %v3131_v24, %v753_v46  ;;  %1715 = vmatpush.msrb.mxu2 %v1247_v16  ;;  %v3891_v46 = vmax.f32 %v3539_v38, 0.0 }
 0x1e2   : > { %v3530_v51 = vadd.f32 %v944_v19, %v880_v0  ;;  %1362 = vmatmul.f32.gmra.mxu0 %v3939_v10  ;;  %1427 = vmatmul.f32.gmra.mxu1 %v3889_v13  ;;  %v1279_v19 = vld [vmem:[%s2632_s14 + $0x308] sm:$0xff]  ;;  %v756_v0 = vadd.f32 %v3142_v36, %v2918_v2  ;;  %v3943_v13 = vld [vmem:[#allocation24_spill] sm:$0xff] }
 0x1e3   : > { %v3887_v17 = vmax.f32 %v3526_v29, 0.0  ;;  %3940 = vst [vmem:[#allocation35_spill] sm:$0xff] %v3542_v52  ;;  %1780 = vmatpush.msrb.mxu3 %v1279_v19  ;;  %v3890_v55 = vmax.f32 %v3542_v52, 0.0 }
 0x1e4   : > { %v3888_v42 = vmax.f32 %v3530_v51, 0.0  ;;  %v3571_v36 = vadd.f32 %v3943_v13, %v756_v0  ;;  %v3945_v0 = vld [vmem:[#allocation26_spill] sm:$0xff] }
 0x1e5   : > { %1554 = vmatmul.f32.gmra.mxu3 %v3887_v17 }
 0x1e6   : > { %v1009_v37 = vpop.f32.mrf.mxu2  ;;  %1492 = vmatmul.f32.gmra.mxu2 %v3888_v42  ;;  %v3896_v13 = vmax.f32 %v3571_v36, 0.0 }
 0x1e7   : > { %v1010_v32 = vadd.f32 %v1009_v37, %v3184_v11  ;;  %v882_v9 = vpop.f32.mrf.mxu0  ;;  %v947_v24 = vpop.f32.mrf.mxu1  ;;  %v3567_v37 = vadd.f32 %v3942_v18, %v626_v6  ;;  %v3944_v18 = vld [vmem:[#allocation22_spill] sm:$0xff] }
 0x1e8   : > { %v883_v10 = vadd.f32 %v882_v9, %v3162_v34  ;;  %v1074_v16 = vpop.f32.mrf.mxu3 }
 0x1e9   : > { %v3558_v17 = vadd.f32 %v1074_v16, %v1010_v32 }
 0x1ea   : > { %v3560_v19 = vadd.f32 %v947_v24, %v883_v10  ;;  %1365 = vmatmul.f32.gmra.mxu0 %v3891_v46  ;;  %1430 = vmatmul.f32.gmra.mxu1 %v3890_v55  ;;  %v3901_v24 = vmax.f32 %v3567_v37, 0.0  ;;  %v629_v55 = vadd.f32 %v3944_v18, %v3137_v33  ;;  %v759_v46 = vadd.f32 %v3945_v0, %v2918_v2 }
 0x1eb   : > { %3941 = vst [vmem:[#allocation36_spill] sm:$0xff] %v3558_v17  ;;  %v3892_v42 = vmax.f32 %v3558_v17, 0.0 }
 0x1ec   : > { %v3895_v9 = vmax.f32 %v3560_v19, 0.0  ;;  %v3599_v2 = vadd.f32 %v3174_v39, %v759_v46 }
 0x1ed   : > { %1557 = vmatmul.f32.gmra.mxu3 %v3892_v42 }
 0x1ee   : > { %v1012_v32 = vpop.f32.mrf.mxu2  ;;  %1495 = vmatmul.f32.gmra.mxu2 %v3895_v9  ;;  %3949 = vst [vmem:[#allocation22_spill] sm:$0xff] %v3599_v2 }
 0x1ef   : > { %v1013_v10 = vadd.f32 %v1012_v32, %v3184_v11  ;;  %v885_v6 = vpop.f32.mrf.mxu0  ;;  %v950_v16 = vpop.f32.mrf.mxu1  ;;  %v3947_v32 = vld [vmem:[#allocation23_spill] sm:$0xff] }
 0x1f0   : > { %v886_v42 = vadd.f32 %v885_v6, %v3162_v34  ;;  %v1077_v17 = vpop.f32.mrf.mxu3  ;;  %v3596_v18 = vadd.f32 %v3947_v32, %v629_v55  ;;  %v3899_v55 = vmax.f32 %v3599_v2, 0.0 }
 0x1f1   : > { %v3586_v52 = vadd.f32 %v1077_v17, %v1013_v10 }
 0x1f2   : > { %v3588_v9 = vadd.f32 %v950_v16, %v886_v42  ;;  %1368 = vmatmul.f32.gmra.mxu0 %v3901_v24  ;;  %1433 = vmatmul.f32.gmra.mxu1 %v3896_v13  ;;  %3948 = vst [vmem:[#allocation24_spill] sm:$0xff] %v3596_v18  ;;  %v3900_v0 = vmax.f32 %v3596_v18, 0.0 }
 0x1f3   : > { %v3898_v33 = vmax.f32 %v3586_v52, 0.0 }
 0x1f4   : > { %3946 = vst [vmem:[#allocation21_spill] sm:$0xff] %v3588_v9  ;;  %v3897_v6 = vmax.f32 %v3588_v9, 0.0 }
 0x1f5   : > { %1560 = vmatmul.f32.gmra.mxu3 %v3898_v33 }
 0x1f6   : > { %v1015_v17 = vpop.f32.mrf.mxu2  ;;  %1498 = vmatmul.f32.gmra.mxu2 %v3897_v6 }
 0x1f7   : > { %v1016_v42 = vadd.f32 %v1015_v17, %v3184_v11  ;;  %v888_v10 = vpop.f32.mrf.mxu0  ;;  %v953_v16 = vpop.f32.mrf.mxu1 }
 0x1f8   : > { %v889_v39 = vadd.f32 %v888_v10, %v3162_v34  ;;  %v1080_v46 = vpop.f32.mrf.mxu3 }
 0x1f9   : > { %v3610_v32 = vadd.f32 %v1080_v46, %v1016_v42  ;;  %v3953_v46 = vld [vmem:[#allocation25_spill] sm:$0xff] }
 0x1fa   : > { %v3612_v13 = vadd.f32 %v953_v16, %v889_v39  ;;  %1371 = vmatmul.f32.gmra.mxu0 %v3900_v0  ;;  %1436 = vmatmul.f32.gmra.mxu1 %v3899_v55  ;;  %v3954_v55 = vmax.f32 %v3953_v46, 0.0  ;;  %v3955_v0 = vld [vmem:[#allocation20_spill] sm:$0xff] }
 0x1fb   : > { %3950 = vst [vmem:[#allocation26_spill] sm:$0xff] %v3610_v32  ;;  %v3903_v17 = vmax.f32 %v3610_v32, 0.0  ;;  %v3956_v24 = vmax.f32 %v3955_v0, 0.0  ;;  %v3962_v0 = vld [vmem:[#allocation28_spill] sm:$0xff] }
 0x1fc   : > { %3951 = vst [vmem:[#allocation23_spill] sm:$0xff] %v3612_v13  ;;  %v3904_v6 = vmax.f32 %v3612_v13, 0.0  ;;  %v3963_v46 = vmax.f32 %v3962_v0, 0.0 }
 0x1fd   : > { %1563 = vmatmul.f32.gmra.mxu3 %v3903_v17  ;;  %v3957_v17 = vld [vmem:[#allocation27_spill] sm:$0xff] }
 0x1fe   : > { %v1018_v33 = vpop.f32.mrf.mxu2  ;;  %1501 = vmatmul.f32.gmra.mxu2 %v3904_v6  ;;  %v3958_v6 = vmax.f32 %v3957_v17, 0.0 }
 0x1ff   : > { %v1019_v34 = vadd.f32 %v1018_v33, %v3184_v11  ;;  %v1327_v42 = vpop.f32.mrf.mxu0  ;;  %v1392_v10 = vpop.f32.mrf.mxu1 }
 0x200   : > { %v1083_v16 = vpop.f32.mrf.mxu3 }
 0x201   : > { %v3625_v39 = vadd.f32 %v1083_v16, %v1019_v34  ;;  %v3959_v34 = vmax.f32 %v3187_v3, 0.0  ;;  %v3960_v16 = vmax.f32 %v2945_v14, 0.0  ;;  %v3964_v3 = vmax.f32 %v3212_v23, 0.0 }
 0x202   : > { %1586 = vmatmul.f32.vlgmr.msrb.gmra.mxu0 %v3954_v55  ;;  %1651 = vmatmul.f32.vlgmr.msrb.gmra.mxu1 %v3956_v24  ;;  %v1393_v55 = vadd.f32 %v1392_v10, %v1327_v42  ;;  %v3961_v24 = vmax.f32 %v3202_v48, 0.0  ;;  %v3965_v14 = vmax.f32 %v2960_v28, 0.0  ;;  %v3966_v48 = vmax.f32 %v3229_v40, 0.0 }
 0x203   : > { %3952 = vst [vmem:[#allocation37_spill] sm:$0xff] %v3625_v39  ;;  %v3906_v32 = vmax.f32 %v3625_v39, 0.0  ;;  %v3970_v28 = vmax.f32 %v2975_v35, 0.0  ;;  %v3971_v40 = vmax.f32 %v3256_v31, 0.0  ;;  %v3975_v35 = vmax.f32 %v2990_v41, 0.0 }
 0x204   : > { %v3976_v31 = vmax.f32 %v3283_v58, 0.0  ;;  %v3980_v41 = vmax.f32 %v3005_v47, 0.0  ;;  %v3981_v58 = vmax.f32 %v3310_v25, 0.0  ;;  %v3985_v47 = vmax.f32 %v3020_v53, 0.0 }
 0x205   : > { %1566 = vmatmul.f32.gmra.mxu3 %v3906_v32  ;;  %v3986_v25 = vmax.f32 %v3337_v45, 0.0  ;;  %v3990_v53 = vmax.f32 %v3035_v59, 0.0  ;;  %v3991_v45 = vmax.f32 %v3366_v22, 0.0  ;;  %v3994_v59 = vmax.f32 %v3379_v7, 0.0 }
 0x206   : > { %1716 = vmatmul.f32.vlgmr.msrb.gmra.mxu2 %v3958_v6  ;;  %v1150_v6 = vld [vmem:[#allocation2 + $0xb0] sm:$0xff]  ;;  %v3995_v22 = vmax.f32 %v3398_v12, 0.0  ;;  %v3998_v7 = vmax.f32 %v3411_v44, 0.0  ;;  %v3999_v12 = vmax.f32 %v3430_v61, 0.0  ;;  %v4002_v44 = vmax.f32 %v3443_v54, 0.0 }
 0x207   : > { %v1330_v11 = vpop.f32.mrf.mxu0  ;;  %v1395_v33 = vpop.f32.mrf.mxu1  ;;  %v4003_v61 = vmax.f32 %v3462_v5, 0.0  ;;  %v4006_v54 = vmax.f32 %v3475_v21, 0.0  ;;  %v4007_v5 = vmax.f32 %v3494_v15, 0.0  ;;  %v4011_v21 = vmax.f32 %v3507_v4, 0.0  ;;  %v4015_v4 = vld [vmem:[#allocation35_spill] sm:$0xff] }
 0x208   : > { %v1396_v10 = vadd.f32 %v1395_v33, %v1330_v11  ;;  %v3972_v33 = vld [vmem:[#allocation30_spill] sm:$0xff]  ;;  %v4012_v15 = vmax.f32 %v3526_v29, 0.0  ;;  %v4017_v29 = vld [vmem:[#allocation36_spill] sm:$0xff] }
 0x209   : > { %v1457_v13 = vpop.f32.mrf.mxu2 }
 0x20a   : > { %1589 = vmatmul.f32.gmra.mxu0 %v3959_v34  ;;  %1654 = vmatmul.f32.gmra.mxu1 %v3960_v16  ;;  %v1458_v32 = vadd.f32 %v1457_v13, %v1393_v55  ;;  %v3967_v34 = vld [vmem:[#allocation29_spill] sm:$0xff] }
 0x20b   : > { %v3968_v13 = vmax.f32 %v3967_v34, 0.0  ;;  %v3974_v34 = vmax.f32 %v3266_v30, 0.0 }
 0x20d   : > { %1781 = vmatmul.f32.vlgmr.msrb.gmra.mxu3 %v3961_v24 }
 0x20e   : > { %1719 = vmatmul.f32.gmra.mxu2 %v3963_v46  ;;  %v3969_v46 = vmax.f32 %v3239_v1, 0.0 }
 0x20f   : > { %v1333_v39 = vpop.f32.mrf.mxu0  ;;  %v1398_v17 = vpop.f32.mrf.mxu1 }
 0x210   : > { %v1522_v2 = vpop.f32.mrf.mxu3  ;;  %v1399_v11 = vadd.f32 %v1398_v17, %v1333_v39 }
 0x211   : > { %v1523_v18 = vadd.f32 %v1522_v2, %v1458_v32  ;;  %v1460_v9 = vpop.f32.mrf.mxu2  ;;  %v1152_v2 = vld [vmem:[#allocation2 + $0xd8] sm:$0xff] }
 0x212   : > { %1592 = vmatmul.f32.gmra.mxu0 %v3964_v3  ;;  %1657 = vmatmul.f32.gmra.mxu1 %v3965_v14  ;;  %v1461_v16 = vadd.f32 %v1460_v9, %v1396_v10  ;;  %v3973_v9 = vmax.f32 %v3972_v33, 0.0 }
 0x213   : > { %v1830_v42 = vadd.f32 %v1523_v18, %v1150_v6 }
 0x215   : > { %1862 = vst [vmem:[#allocation2 + $0xb0] sm:$0xff] %v1830_v42  ;;  %1784 = vmatmul.f32.gmra.mxu3 %v3966_v48  ;;  %v1154_v42 = vld [vmem:[#allocation2 + $0x50] sm:$0xff] }
 0x216   : > { %1722 = vmatmul.f32.gmra.mxu2 %v3968_v13  ;;  %v3977_v13 = vld [vmem:[#allocation31_spill] sm:$0xff] }
 0x217   : > { %v1336_v55 = vpop.f32.mrf.mxu0  ;;  %v1401_v24 = vpop.f32.mrf.mxu1 }
 0x218   : > { %v1525_v32 = vpop.f32.mrf.mxu3  ;;  %v1402_v17 = vadd.f32 %v1401_v24, %v1336_v55 }
 0x219   : > { %v1526_v0 = vadd.f32 %v1525_v32, %v1461_v16  ;;  %v1463_v23 = vpop.f32.mrf.mxu2  ;;  %v3978_v16 = vmax.f32 %v3977_v13, 0.0  ;;  %v1160_v13 = vld [vmem:[#allocation2 + $0xe8] sm:$0xff] }
 0x21a   : > { %1595 = vmatmul.f32.gmra.mxu0 %v3969_v46  ;;  %1660 = vmatmul.f32.gmra.mxu1 %v3970_v28  ;;  %v1464_v6 = vadd.f32 %v1463_v23, %v1399_v11  ;;  %v1156_v23 = vld [vmem:[#allocation2 + $0x30] sm:$0xff]  ;;  %v3982_v11 = vld [vmem:[#allocation32_spill] sm:$0xff] }
 0x21b   : > { %v1832_v18 = vadd.f32 %v1526_v0, %v1152_v2 }
 0x21d   : > { %1864 = vst [vmem:[#allocation2 + $0xd8] sm:$0xff] %v1832_v18  ;;  %1787 = vmatmul.f32.gmra.mxu3 %v3971_v40  ;;  %v3979_v18 = vmax.f32 %v3293_v49, 0.0  ;;  %v3983_v40 = vmax.f32 %v3982_v11, 0.0 }
 0x21e   : > { %1725 = vmatmul.f32.gmra.mxu2 %v3973_v9 }
 0x21f   : > { %v1339_v3 = vpop.f32.mrf.mxu0  ;;  %v1404_v14 = vpop.f32.mrf.mxu1 }
 0x220   : > { %v1528_v10 = vpop.f32.mrf.mxu3  ;;  %v1405_v24 = vadd.f32 %v1404_v14, %v1339_v3 }
 0x221   : > { %v1529_v48 = vadd.f32 %v1528_v10, %v1464_v6  ;;  %v1466_v1 = vpop.f32.mrf.mxu2 }
 0x222   : > { %1598 = vmatmul.f32.gmra.mxu0 %v3974_v34  ;;  %1663 = vmatmul.f32.gmra.mxu1 %v3975_v35  ;;  %v1467_v2 = vadd.f32 %v1466_v1, %v1402_v17  ;;  %v3984_v1 = vmax.f32 %v3320_v57, 0.0  ;;  %v3987_v34 = vld [vmem:[#allocation33_spill] sm:$0xff] }
 0x223   : > { %v1834_v39 = vadd.f32 %v1529_v48, %v1154_v42  ;;  %v1158_v42 = vld [vmem:[#allocation2 + $0x80] sm:$0xff]  ;;  %v3988_v35 = vmax.f32 %v3987_v34, 0.0  ;;  %v1166_v34 = vld [vmem:[#allocation2 + $0x38] sm:$0xff] }
 0x225   : > { %1866 = vst [vmem:[#allocation2 + $0x50] sm:$0xff] %v1834_v39  ;;  %1790 = vmatmul.f32.gmra.mxu3 %v3976_v31 }
 0x226   : > { %1728 = vmatmul.f32.gmra.mxu2 %v3978_v16 }
 0x227   : > { %v1342_v32 = vpop.f32.mrf.mxu0  ;;  %v1407_v0 = vpop.f32.mrf.mxu1 }
 0x228   : > { %v1531_v46 = vpop.f32.mrf.mxu3  ;;  %v1408_v14 = vadd.f32 %v1407_v0, %v1342_v32 }
 0x229   : > { %v1532_v28 = vadd.f32 %v1531_v46, %v1467_v2  ;;  %v1469_v30 = vpop.f32.mrf.mxu2  ;;  %v3992_v46 = vmax.f32 %v3368_v43, 0.0  ;;  %v3996_v43 = vmax.f32 %v3400_v50, 0.0  ;;  %v4000_v50 = vmax.f32 %v3432_v62, 0.0 }
 0x22a   : > { %1601 = vmatmul.f32.gmra.mxu0 %v3979_v18  ;;  %1666 = vmatmul.f32.gmra.mxu1 %v3980_v41  ;;  %v1470_v33 = vadd.f32 %v1469_v30, %v1405_v24  ;;  %v1162_v41 = vld [vmem:[#allocation2 + $0x60] sm:$0xff]  ;;  %v4004_v62 = vmax.f32 %v3464_v26, 0.0  ;;  %v4008_v26 = vld [vmem:[#allocation34_spill] sm:$0xff] }
 0x22b   : > { %v1836_v55 = vadd.f32 %v1532_v28, %v1156_v23  ;;  %v3989_v23 = vmax.f32 %v3347_v63, 0.0 }
 0x22d   : > { %1868 = vst [vmem:[#allocation2 + $0x30] sm:$0xff] %v1836_v55  ;;  %1793 = vmatmul.f32.gmra.mxu3 %v3981_v58  ;;  %v3993_v58 = vmax.f32 %v3375_v20, 0.0 }
 0x22e   : > { %1731 = vmatmul.f32.gmra.mxu2 %v3983_v40 }
 0x22f   : > { %v1345_v9 = vpop.f32.mrf.mxu0  ;;  %v1410_v6 = vpop.f32.mrf.mxu1 }
 0x230   : > { %v1534_v10 = vpop.f32.mrf.mxu3  ;;  %v1411_v0 = vadd.f32 %v1410_v6, %v1345_v9 }
 0x231   : > { %v1535_v48 = vadd.f32 %v1534_v10, %v1470_v33  ;;  %v1472_v49 = vpop.f32.mrf.mxu2 }
 0x232   : > { %1604 = vmatmul.f32.gmra.mxu0 %v3984_v1  ;;  %1669 = vmatmul.f32.gmra.mxu1 %v3985_v47  ;;  %v1473_v39 = vadd.f32 %v1472_v49, %v1408_v14  ;;  %v3997_v49 = vmax.f32 %v3408_v56, 0.0 }
 0x233   : > { %v1838_v3 = vadd.f32 %v1535_v48, %v1158_v42  ;;  %v1164_v42 = vld [vmem:[#allocation2 + $0x8] sm:$0xff] }
 0x235   : > { %1870 = vst [vmem:[#allocation2 + $0x80] sm:$0xff] %v1838_v3  ;;  %1796 = vmatmul.f32.gmra.mxu3 %v3986_v25 }
 0x236   : > { %1734 = vmatmul.f32.gmra.mxu2 %v3988_v35 }
 0x237   : > { %v1348_v17 = vpop.f32.mrf.mxu0  ;;  %v1413_v31 = vpop.f32.mrf.mxu1 }
 0x238   : > { %v1537_v16 = vpop.f32.mrf.mxu3  ;;  %v1414_v40 = vadd.f32 %v1413_v31, %v1348_v17  ;;  %v4001_v17 = vmax.f32 %v3439_v27, 0.0 }
 0x239   : > { %v1538_v2 = vadd.f32 %v1537_v16, %v1473_v39  ;;  %v1475_v57 = vpop.f32.mrf.mxu2 }
 0x23a   : > { %1607 = vmatmul.f32.gmra.mxu0 %v3989_v23  ;;  %1672 = vmatmul.f32.gmra.mxu1 %v3990_v53  ;;  %v1476_v28 = vadd.f32 %v1475_v57, %v1411_v0  ;;  %v1168_v23 = vld [vmem:[#allocation2 + $0x40] sm:$0xff]  ;;  %v4005_v0 = vmax.f32 %v3472_v60, 0.0 }
 0x23b   : > { %v1840_v32 = vadd.f32 %v1538_v2, %v1160_v13 }
 0x23d   : > { %1872 = vst [vmem:[#allocation2 + $0xe8] sm:$0xff] %v1840_v32  ;;  %1799 = vmatmul.f32.gmra.mxu3 %v3991_v45 }
 0x23e   : > { %1737 = vmatmul.f32.gmra.mxu2 %v3992_v46 }
 0x23f   : > { %v1351_v30 = vpop.f32.mrf.mxu0  ;;  %v1416_v18 = vpop.f32.mrf.mxu1 }
 0x240   : > { %v1540_v55 = vpop.f32.mrf.mxu3  ;;  %v1417_v47 = vadd.f32 %v1416_v18, %v1351_v30 }
 0x241   : > { %v1541_v24 = vadd.f32 %v1540_v55, %v1476_v28  ;;  %v1478_v63 = vpop.f32.mrf.mxu2  ;;  %v4009_v28 = vmax.f32 %v4008_v26, 0.0  ;;  %v1170_v55 = vld [vmem:[#allocation2 + $0xe0] sm:$0xff] }
 0x242   : > { %1610 = vmatmul.f32.gmra.mxu0 %v3993_v58  ;;  %1675 = vmatmul.f32.gmra.mxu1 %v3994_v59  ;;  %v1479_v33 = vadd.f32 %v1478_v63, %v1414_v40  ;;  %v4010_v58 = vmax.f32 %v3503_v8, 0.0  ;;  %v4013_v40 = vmax.f32 %v3530_v51, 0.0  ;;  %v4019_v51 = vmax.f32 %v3560_v19, 0.0  ;;  %v4023_v19 = vld [vmem:[#allocation21_spill] sm:$0xff]  ;;  %v1178_v26 = vld [vmem:[#allocation2 + $0xa0] sm:$0xff] }
 0x243   : > { %v1842_v11 = vadd.f32 %v1541_v24, %v1162_v41 }
 0x245   : > { %1874 = vst [vmem:[#allocation2 + $0x60] sm:$0xff] %v1842_v11  ;;  %1802 = vmatmul.f32.gmra.mxu3 %v3995_v22 }
 0x246   : > { %1740 = vmatmul.f32.gmra.mxu2 %v3996_v43 }
 0x247   : > { %v1354_v9 = vpop.f32.mrf.mxu0  ;;  %v1419_v6 = vpop.f32.mrf.mxu1 }
 0x248   : > { %v1543_v10 = vpop.f32.mrf.mxu3  ;;  %v1420_v13 = vadd.f32 %v1419_v6, %v1354_v9  ;;  %v1172_v9 = vld [vmem:[#allocation2 + $0x70] sm:$0xff] }
 0x249   : > { %v1544_v48 = vadd.f32 %v1543_v10, %v1479_v33  ;;  %v1481_v20 = vpop.f32.mrf.mxu2  ;;  %v4014_v10 = vmax.f32 %v3539_v38, 0.0 }
 0x24a   : > { %1613 = vmatmul.f32.gmra.mxu0 %v3997_v49  ;;  %1678 = vmatmul.f32.gmra.mxu1 %v3998_v7  ;;  %v1482_v3 = vadd.f32 %v1481_v20, %v1417_v47  ;;  %v4018_v7 = vmax.f32 %v4017_v29, 0.0 }
 0x24b   : > { %v1844_v1 = vadd.f32 %v1544_v48, %v1164_v42  ;;  %v4016_v48 = vmax.f32 %v4015_v4, 0.0 }
 0x24d   : > { %1876 = vst [vmem:[#allocation2 + $0x8] sm:$0xff] %v1844_v1  ;;  %1805 = vmatmul.f32.gmra.mxu3 %v3999_v12 }
 0x24e   : > { %1743 = vmatmul.f32.gmra.mxu2 %v4000_v50  ;;  %v1174_v50 = vld [vmem:[#allocation2 + $0xa8] sm:$0xff] }
 0x24f   : > { %v1357_v14 = vpop.f32.mrf.mxu0  ;;  %v1422_v25 = vpop.f32.mrf.mxu1 }
 0x250   : > { %v1546_v35 = vpop.f32.mrf.mxu3  ;;  %v1423_v46 = vadd.f32 %v1422_v25, %v1357_v14  ;;  %v4020_v25 = vmax.f32 %v3567_v37, 0.0 }
 0x251   : > { %v1547_v39 = vadd.f32 %v1546_v35, %v1482_v3  ;;  %v1484_v56 = vpop.f32.mrf.mxu2 }
 0x252   : > { %1616 = vmatmul.f32.gmra.mxu0 %v4001_v17  ;;  %1681 = vmatmul.f32.gmra.mxu1 %v4002_v44  ;;  %v1485_v16 = vadd.f32 %v1484_v56, %v1420_v13  ;;  %v4022_v56 = vmax.f32 %v3586_v52, 0.0  ;;  %v4024_v17 = vmax.f32 %v4023_v19, 0.0  ;;  %v4029_v52 = vld [vmem:[#allocation26_spill] sm:$0xff] }
 0x253   : > { %v1846_v31 = vadd.f32 %v1547_v39, %v1166_v34  ;;  %v4021_v34 = vmax.f32 %v3571_v36, 0.0  ;;  %v4027_v36 = vld [vmem:[#allocation22_spill] sm:$0xff] }
 0x255   : > { %1878 = vst [vmem:[#allocation2 + $0x38] sm:$0xff] %v1846_v31  ;;  %1808 = vmatmul.f32.gmra.mxu3 %v4003_v61  ;;  %v1176_v61 = vld [vmem:[#allocation2 + $0x10] sm:$0xff] }
 0x256   : > { %1746 = vmatmul.f32.gmra.mxu2 %v4004_v62 }
 0x257   : > { %v1360_v2 = vpop.f32.mrf.mxu0  ;;  %v1425_v57 = vpop.f32.mrf.mxu1 }
 0x258   : > { %v1549_v53 = vpop.f32.mrf.mxu3  ;;  %v1426_v11 = vadd.f32 %v1425_v57, %v1360_v2  ;;  %v4025_v2 = vld [vmem:[#allocation24_spill] sm:$0xff] }
 0x259   : > { %v1550_v32 = vadd.f32 %v1549_v53, %v1485_v16  ;;  %v1487_v27 = vpop.f32.mrf.mxu2  ;;  %v4026_v57 = vmax.f32 %v4025_v2, 0.0 }
 0x25a   : > { %1619 = vmatmul.f32.gmra.mxu0 %v4005_v0  ;;  %1684 = vmatmul.f32.gmra.mxu1 %v4006_v54  ;;  %v1488_v30 = vadd.f32 %v1487_v27, %v1423_v46  ;;  %v4030_v27 = vmax.f32 %v4029_v52, 0.0  ;;  %v4031_v0 = vld [vmem:[#allocation23_spill] sm:$0xff] }
 0x25b   : > { %v1848_v45 = vadd.f32 %v1550_v32, %v1168_v23  ;;  %v4028_v23 = vmax.f32 %v4027_v36, 0.0  ;;  %v4032_v54 = vmax.f32 %v4031_v0, 0.0 }
 0x25d   : > { %1880 = vst [vmem:[#allocation2 + $0x40] sm:$0xff] %v1848_v45  ;;  %1811 = vmatmul.f32.gmra.mxu3 %v4007_v5 }
 0x25e   : > { %1749 = vmatmul.f32.gmra.mxu2 %v4009_v28 }
 0x25f   : > { %v1363_v18 = vpop.f32.mrf.mxu0  ;;  %v1428_v41 = vpop.f32.mrf.mxu1 }
 0x260   : > { %v1552_v24 = vpop.f32.mrf.mxu3  ;;  %v1429_v49 = vadd.f32 %v1428_v41, %v1363_v18 }
 0x261   : > { %v1553_v63 = vadd.f32 %v1552_v24, %v1488_v30  ;;  %v1490_v60 = vpop.f32.mrf.mxu2  ;;  %v4033_v24 = vld [vmem:[#allocation37_spill] sm:$0xff] }
 0x262   : > { %1622 = vmatmul.f32.gmra.mxu0 %v4010_v58  ;;  %1687 = vmatmul.f32.gmra.mxu1 %v4011_v21  ;;  %v1491_v22 = vadd.f32 %v1490_v60, %v1426_v11 }
 0x263   : > { %v1850_v59 = vadd.f32 %v1553_v63, %v1170_v55  ;;  %v4034_v63 = vmax.f32 %v4033_v24, 0.0 }
 0x265   : > { %1882 = vst [vmem:[#allocation2 + $0xe0] sm:$0xff] %v1850_v59  ;;  %1814 = vmatmul.f32.gmra.mxu3 %v4012_v15  ;;  %v1180_v59 = vld [vmem:[#allocation2 + $0x20] sm:$0xff] }
 0x266   : > { %1752 = vmatmul.f32.gmra.mxu2 %v4013_v40 }
 0x267   : > { %v1366_v43 = vpop.f32.mrf.mxu0  ;;  %v1431_v33 = vpop.f32.mrf.mxu1 }
 0x268   : > { %v1555_v6 = vpop.f32.mrf.mxu3  ;;  %v1432_v39 = vadd.f32 %v1431_v33, %v1366_v43 }
 0x269   : > { %v1556_v42 = vadd.f32 %v1555_v6, %v1491_v22  ;;  %v1493_v8 = vpop.f32.mrf.mxu2 }
 0x26a   : > { %1625 = vmatmul.f32.gmra.mxu0 %v4014_v10  ;;  %1690 = vmatmul.f32.gmra.mxu1 %v4016_v48  ;;  %v1494_v1 = vadd.f32 %v1493_v8, %v1429_v49 }
 0x26b   : > { %v1852_v20 = vadd.f32 %v1556_v42, %v1172_v9  ;;  %v1151_v42 = vld [vmem:[#allocation2] sm:$0xff] }
 0x26d   : > { %1884 = vst [vmem:[#allocation2 + $0x70] sm:$0xff] %v1852_v20  ;;  %1817 = vmatmul.f32.gmra.mxu3 %v4018_v7 }
 0x26e   : > { %1755 = vmatmul.f32.gmra.mxu2 %v4019_v51  ;;  %v1153_v51 = vld [vmem:[#allocation2 + $0x18] sm:$0xff] }
 0x26f   : > { %v1369_v47 = vpop.f32.mrf.mxu0  ;;  %v1434_v12 = vpop.f32.mrf.mxu1 }
 0x270   : > { %v1558_v3 = vpop.f32.mrf.mxu3  ;;  %v1435_v32 = vadd.f32 %v1434_v12, %v1369_v47 }
 0x271   : > { %v1559_v14 = vadd.f32 %v1558_v3, %v1494_v1  ;;  %v1496_v38 = vpop.f32.mrf.mxu2 }
 0x272   : > { %1628 = vmatmul.f32.gmra.mxu0 %v4020_v25  ;;  %1693 = vmatmul.f32.gmra.mxu1 %v4021_v34  ;;  %v1497_v44 = vadd.f32 %v1496_v38, %v1432_v39  ;;  %v1155_v34 = vld [vmem:[#allocation2 + $0x68] sm:$0xff] }
 0x273   : > { %v1854_v35 = vadd.f32 %v1559_v14, %v1174_v50 }
 0x275   : > { %1886 = vst [vmem:[#allocation2 + $0xa8] sm:$0xff] %v1854_v35  ;;  %1820 = vmatmul.f32.gmra.mxu3 %v4022_v56 }
 0x276   : > { %1758 = vmatmul.f32.gmra.mxu2 %v4024_v17 }
 0x277   : > { %v1372_v31 = vpop.f32.mrf.mxu0  ;;  %v1437_v13 = vpop.f32.mrf.mxu1 }
 0x278   : > { %v1561_v62 = vpop.f32.mrf.mxu3  ;;  %v1438_v55 = vadd.f32 %v1437_v13, %v1372_v31 }
 0x279   : > { %v1562_v16 = vadd.f32 %v1561_v62, %v1497_v44  ;;  %v1499_v37 = vpop.f32.mrf.mxu2 }
 0x27a   : > { %1631 = vmatmul.f32.gmra.mxu0 %v4026_v57  ;;  %1696 = vmatmul.f32.gmra.mxu1 %v4028_v23  ;;  %v1500_v45 = vadd.f32 %v1499_v37, %v1435_v32  ;;  %v1159_v32 = vld [vmem:[#allocation2 + $0x88] sm:$0xff] }
 0x27b   : > { %v1856_v53 = vadd.f32 %v1562_v16, %v1176_v61  ;;  %v1157_v61 = vld [vmem:[#allocation2 + $0x48] sm:$0xff] }
 0x27d   : > { %1888 = vst [vmem:[#allocation2 + $0x10] sm:$0xff] %v1856_v53  ;;  %1823 = vmatmul.f32.gmra.mxu3 %v4030_v27 }
 0x27e   : > { %1761 = vmatmul.f32.gmra.mxu2 %v4032_v54 }
 0x27f   : > { %v1587_v46 = vpop.f32.mrf.mxu0  ;;  %v1652_v5 = vpop.f32.mrf.mxu1 }
 0x280   : > { %v1564_v28 = vpop.f32.mrf.mxu3  ;;  %v1653_v43 = vadd.f32 %v1652_v5, %v1587_v46 }
 0x281   : > { %v1565_v30 = vadd.f32 %v1564_v28, %v1500_v45  ;;  %v1502_v18 = vpop.f32.mrf.mxu2  ;;  %v1161_v28 = vld [vmem:[#allocation2 + $0xb8] sm:$0xff] }
 0x282   : > { %v1503_v60 = vadd.f32 %v1502_v18, %v1438_v55 }
 0x283   : > { %v1858_v41 = vadd.f32 %v1565_v30, %v1178_v26 }
 0x285   : > { %1890 = vst [vmem:[#allocation2 + $0xa0] sm:$0xff] %v1858_v41  ;;  %1826 = vmatmul.f32.gmra.mxu3 %v4034_v63 }
 0x287   : > { %v1590_v58 = vpop.f32.mrf.mxu0  ;;  %v1655_v21 = vpop.f32.mrf.mxu1 }
 0x288   : > { %v1567_v11 = vpop.f32.mrf.mxu3  ;;  %v1656_v20 = vadd.f32 %v1655_v21, %v1590_v58  ;;  %v1163_v21 = vld [vmem:[#allocation2 + $0xf0] sm:$0xff] }
 0x289   : > { %v1568_v15 = vadd.f32 %v1567_v11, %v1503_v60  ;;  %v1717_v40 = vpop.f32.mrf.mxu2 }
 0x28a   : > { %v1718_v33 = vadd.f32 %v1717_v40, %v1653_v43 }
 0x28b   : > { %v1860_v22 = vadd.f32 %v1568_v15, %v1180_v59 }
 0x28d   : > { %1892 = vst [vmem:[#allocation2 + $0x20] sm:$0xff] %v1860_v22 }
 0x28f   : > { %v1593_v9 = vpop.f32.mrf.mxu0  ;;  %v1658_v6 = vpop.f32.mrf.mxu1 }
 0x290   : > { %v1782_v8 = vpop.f32.mrf.mxu3  ;;  %v1659_v3 = vadd.f32 %v1658_v6, %v1593_v9  ;;  %v1165_v6 = vld [vmem:[#allocation2 + $0x78] sm:$0xff] }
 0x291   : > { %v1783_v10 = vadd.f32 %v1782_v8, %v1718_v33  ;;  %v1720_v4 = vpop.f32.mrf.mxu2 }
 0x292   : > { %v1721_v49 = vadd.f32 %v1720_v4, %v1656_v20 }
 0x293   : > { %v1831_v48 = vadd.f32 %v1783_v10, %v1151_v42 }
 0x295   : > { %1863 = vst [vmem:[#allocation2] sm:$0xff] %v1831_v48 }
 0x297   : > { %v1596_v29 = vpop.f32.mrf.mxu0  ;;  %v1661_v7 = vpop.f32.mrf.mxu1 }
 0x298   : > { %v1785_v1 = vpop.f32.mrf.mxu3  ;;  %v1662_v17 = vadd.f32 %v1661_v7, %v1596_v29  ;;  %v1167_v7 = vld [vmem:[#allocation2 + $0x58] sm:$0xff] }
 0x299   : > { %v1786_v47 = vadd.f32 %v1785_v1, %v1721_v49  ;;  %v1723_v12 = vpop.f32.mrf.mxu2 }
 0x29a   : > { %v1724_v14 = vadd.f32 %v1723_v12, %v1659_v3 }
 0x29b   : > { %v1833_v50 = vadd.f32 %v1786_v47, %v1153_v51 }
 0x29d   : > { %1865 = vst [vmem:[#allocation2 + $0x18] sm:$0xff] %v1833_v50 }
 0x29f   : > { %v1599_v38 = vpop.f32.mrf.mxu0  ;;  %v1664_v25 = vpop.f32.mrf.mxu1 }
 0x2a0   : > { %v1788_v35 = vpop.f32.mrf.mxu3  ;;  %v1665_v57 = vadd.f32 %v1664_v25, %v1599_v38 }
 0x2a1   : > { %v1789_v39 = vadd.f32 %v1788_v35, %v1724_v14  ;;  %v1726_v56 = vpop.f32.mrf.mxu2  ;;  %v1169_v14 = vld [vmem:[#allocation2 + $0xc8] sm:$0xff] }
 0x2a2   : > { %v1727_v44 = vadd.f32 %v1726_v56, %v1662_v17 }
 0x2a3   : > { %v1835_v19 = vadd.f32 %v1789_v39, %v1155_v34 }
 0x2a5   : > { %1867 = vst [vmem:[#allocation2 + $0x68] sm:$0xff] %v1835_v19 }
 0x2a7   : > { %v1602_v31 = vpop.f32.mrf.mxu0  ;;  %v1667_v13 = vpop.f32.mrf.mxu1 }
 0x2a8   : > { %v1791_v62 = vpop.f32.mrf.mxu3  ;;  %v1668_v45 = vadd.f32 %v1667_v13, %v1602_v31 }
 0x2a9   : > { %v1792_v16 = vadd.f32 %v1791_v62, %v1727_v44  ;;  %v1729_v37 = vpop.f32.mrf.mxu2  ;;  %v1171_v44 = vld [vmem:[#allocation2 + $0x90] sm:$0xff] }
 0x2aa   : > { %v1730_v36 = vadd.f32 %v1729_v37, %v1665_v57 }
 0x2ab   : > { %v1837_v2 = vadd.f32 %v1792_v16, %v1157_v61 }
 0x2ad   : > { %1869 = vst [vmem:[#allocation2 + $0x48] sm:$0xff] %v1837_v2 }
 0x2af   : > { %v1605_v23 = vpop.f32.mrf.mxu0  ;;  %v1670_v53 = vpop.f32.mrf.mxu1 }
 0x2b0   : > { %v1794_v52 = vpop.f32.mrf.mxu3  ;;  %v1671_v24 = vadd.f32 %v1670_v53, %v1605_v23 }
 0x2b1   : > { %v1795_v27 = vadd.f32 %v1794_v52, %v1730_v36  ;;  %v1732_v0 = vpop.f32.mrf.mxu2  ;;  %v1173_v36 = vld [vmem:[#allocation2 + $0xc0] sm:$0xff] }
 0x2b2   : > { %v1733_v46 = vadd.f32 %v1732_v0, %v1668_v45 }
 0x2b3   : > { %v1839_v54 = vadd.f32 %v1795_v27, %v1159_v32 }
 0x2b5   : > { %1871 = vst [vmem:[#allocation2 + $0x88] sm:$0xff] %v1839_v54 }
 0x2b7   : > { %v1608_v5 = vpop.f32.mrf.mxu0  ;;  %v1673_v26 = vpop.f32.mrf.mxu1 }
 0x2b8   : > { %v1797_v30 = vpop.f32.mrf.mxu3  ;;  %v1674_v22 = vadd.f32 %v1673_v26, %v1608_v5 }
 0x2b9   : > { %v1798_v18 = vadd.f32 %v1797_v30, %v1733_v46  ;;  %v1735_v41 = vpop.f32.mrf.mxu2  ;;  %v1175_v46 = vld [vmem:[#allocation2 + $0xd0] sm:$0xff] }
 0x2ba   : > { %v1736_v63 = vadd.f32 %v1735_v41, %v1671_v24 }
 0x2bb   : > { %v1841_v55 = vadd.f32 %v1798_v18, %v1161_v28 }
 0x2bd   : > { %1873 = vst [vmem:[#allocation2 + $0xb8] sm:$0xff] %v1841_v55 }
 0x2bf   : > { %v1611_v60 = vpop.f32.mrf.mxu0  ;;  %v1676_v58 = vpop.f32.mrf.mxu1 }
 0x2c0   : > { %v1800_v59 = vpop.f32.mrf.mxu3  ;;  %v1677_v48 = vadd.f32 %v1676_v58, %v1611_v60 }
 0x2c1   : > { %v1801_v11 = vadd.f32 %v1800_v59, %v1736_v63  ;;  %v1738_v15 = vpop.f32.mrf.mxu2  ;;  %v1177_v63 = vld [vmem:[#allocation2 + $0x28] sm:$0xff] }
 0x2c2   : > { %v1739_v43 = vadd.f32 %v1738_v15, %v1674_v22 }
 0x2c3   : > { %v1843_v40 = vadd.f32 %v1801_v11, %v1163_v21 }
 0x2c5   : > { %1875 = vst [vmem:[#allocation2 + $0xf0] sm:$0xff] %v1843_v40  ;;  %v1179_v40 = vld [vmem:[#allocation2 + $0xf8] sm:$0xff] }
 0x2c7   : > { %v1614_v33 = vpop.f32.mrf.mxu0  ;;  %v1679_v9 = vpop.f32.mrf.mxu1 }
 0x2c8   : > { %v1803_v42 = vpop.f32.mrf.mxu3  ;;  %v1680_v50 = vadd.f32 %v1679_v9, %v1614_v33 }
 0x2c9   : > { %v1804_v8 = vadd.f32 %v1803_v42, %v1739_v43  ;;  %v1741_v10 = vpop.f32.mrf.mxu2 }
 0x2ca   : > { %v1742_v20 = vadd.f32 %v1741_v10, %v1677_v48 }
 0x2cb   : > { %v1845_v4 = vadd.f32 %v1804_v8, %v1165_v6 }
 0x2cd   : > { %1877 = vst [vmem:[#allocation2 + $0x78] sm:$0xff] %v1845_v4  ;;  %v1181_v4 = vld [vmem:[#allocation2 + $0x98] sm:$0xff] }
 0x2cf   : > { %v1617_v49 = vpop.f32.mrf.mxu0  ;;  %v1682_v29 = vpop.f32.mrf.mxu1 }
 0x2d0   : > { %v1806_v51 = vpop.f32.mrf.mxu3  ;;  %v1683_v19 = vadd.f32 %v1682_v29, %v1617_v49 }
 0x2d1   : > { %v1807_v1 = vadd.f32 %v1806_v51, %v1742_v20  ;;  %v1744_v47 = vpop.f32.mrf.mxu2 }
 0x2d2   : > { %v1745_v3 = vadd.f32 %v1744_v47, %v1680_v50 }
 0x2d3   : > { %v1847_v12 = vadd.f32 %v1807_v1, %v1167_v7 }
 0x2d5   : > { %1879 = vst [vmem:[#allocation2 + $0x58] sm:$0xff] %v1847_v12 }
 0x2d7   : > { %v1620_v25 = vpop.f32.mrf.mxu0  ;;  %v1685_v39 = vpop.f32.mrf.mxu1 }
 0x2d8   : > { %v1809_v38 = vpop.f32.mrf.mxu3  ;;  %v1686_v2 = vadd.f32 %v1685_v39, %v1620_v25 }
 0x2d9   : > { %v1810_v34 = vadd.f32 %v1809_v38, %v1745_v3  ;;  %v1747_v35 = vpop.f32.mrf.mxu2 }
 0x2da   : > { %v1748_v17 = vadd.f32 %v1747_v35, %v1683_v19 }
 0x2db   : > { %v1849_v56 = vadd.f32 %v1810_v34, %v1169_v14 }
 0x2dd   : > { %1881 = vst [vmem:[#allocation2 + $0xc8] sm:$0xff] %v1849_v56 }
 0x2df   : > { %v1623_v62 = vpop.f32.mrf.mxu0  ;;  %v1688_v37 = vpop.f32.mrf.mxu1 }
 0x2e0   : > { %v1812_v31 = vpop.f32.mrf.mxu3  ;;  %v1689_v27 = vadd.f32 %v1688_v37, %v1623_v62 }
 0x2e1   : > { %v1813_v13 = vadd.f32 %v1812_v31, %v1748_v17  ;;  %v1750_v61 = vpop.f32.mrf.mxu2 }
 0x2e2   : > { %v1751_v57 = vadd.f32 %v1750_v61, %v1686_v2 }
 0x2e3   : > { %v1851_v16 = vadd.f32 %v1813_v13, %v1171_v44 }
 0x2e5   : > { %1883 = vst [vmem:[#allocation2 + $0x90] sm:$0xff] %v1851_v16 }
 0x2e7   : > { %v1626_v0 = vpop.f32.mrf.mxu0  ;;  %v1691_v54 = vpop.f32.mrf.mxu1 }
 0x2e8   : > { %v1815_v23 = vpop.f32.mrf.mxu3  ;;  %v1692_v18 = vadd.f32 %v1691_v54, %v1626_v0 }
 0x2e9   : > { %v1816_v53 = vadd.f32 %v1815_v23, %v1751_v57  ;;  %v1753_v32 = vpop.f32.mrf.mxu2 }
 0x2ea   : > { %v1754_v45 = vadd.f32 %v1753_v32, %v1689_v27 }
 0x2eb   : > { %v1853_v52 = vadd.f32 %v1816_v53, %v1173_v36 }
 0x2ed   : > { %1885 = vst [vmem:[#allocation2 + $0xc0] sm:$0xff] %v1853_v52 }
 0x2ef   : > { %v1629_v41 = vpop.f32.mrf.mxu0  ;;  %v1694_v24 = vpop.f32.mrf.mxu1 }
 0x2f0   : > { %v1818_v5 = vpop.f32.mrf.mxu3  ;;  %v1695_v11 = vadd.f32 %v1694_v24, %v1629_v41 }
 0x2f1   : > { %v1819_v26 = vadd.f32 %v1818_v5, %v1754_v45  ;;  %v1756_v28 = vpop.f32.mrf.mxu2 }
 0x2f2   : > { %v1757_v55 = vadd.f32 %v1756_v28, %v1692_v18 }
 0x2f3   : > { %v1855_v30 = vadd.f32 %v1819_v26, %v1175_v46 }
 0x2f5   : > { %1887 = vst [vmem:[#allocation2 + $0xd0] sm:$0xff] %v1855_v30 }
 0x2f7   : > { %v1632_v33 = vpop.f32.mrf.mxu0  ;;  %v1697_v9 = vpop.f32.mrf.mxu1 }
 0x2f8   : > { %v1821_v60 = vpop.f32.mrf.mxu3  ;;  %v1698_v8 = vadd.f32 %v1697_v9, %v1632_v33 }
 0x2f9   : > { %v1822_v58 = vadd.f32 %v1821_v60, %v1757_v55  ;;  %v1759_v21 = vpop.f32.mrf.mxu2 }
 0x2fa   : > { %v1760_v15 = vadd.f32 %v1759_v21, %v1695_v11 }
 0x2fb   : > { %v1857_v59 = vadd.f32 %v1822_v58, %v1177_v63 }
 0x2fd   : > { %1889 = vst [vmem:[#allocation2 + $0x28] sm:$0xff] %v1857_v59 }
 0x300   : > { %v1824_v22 = vpop.f32.mrf.mxu3 }
 0x301   : > { %v1825_v43 = vadd.f32 %v1824_v22, %v1760_v15  ;;  %v1762_v42 = vpop.f32.mrf.mxu2 }
 0x302   : > { %v1763_v10 = vadd.f32 %v1762_v42, %v1698_v8 }
 0x303   : > { %v1859_v6 = vadd.f32 %v1825_v43, %v1179_v40 }
 0x305   : > { %1891 = vst [vmem:[#allocation2 + $0xf8] sm:$0xff] %v1859_v6 }
 0x308   : > { %v1827_v48 = vpop.f32.mrf.mxu3 }
 0x309   : > { %v1828_v20 = vadd.f32 %v1827_v48, %v1763_v10  ;;  %1897 = sbr.rel (%p2152_p2) target bundleno = 819 (0x333), region = 64 }
 0x30b   : > { %v1861_v49 = vadd.f32 %v1828_v20, %v1181_v4 }
 0x30d   : > { %1893 = vst [vmem:[#allocation2 + $0x98] sm:$0xff] %v1861_v49 }
 0x30e   : > { %v1898_v29 = vld [vmem:[#allocation2 + $0xb0] sm:$0xff]  ;;  %v1930_v7 = vld [vmem:[%s3824_s4] sm:$0x3]  ;;  %v1900_v12 = vld [vmem:[#allocation2 + $0xd8] sm:$0xff] }
 0x30f   : > { %v1899_v51 = vld [vmem:[#allocation2] sm:$0xff]  ;;  %v3762_v1 = vperm.slane %v1930_v7, 0  ;;  %v3764_v47 = vperm.slane %v1930_v7, 1  ;;  %v1901_v50 = vld [vmem:[#allocation2 + $0x18] sm:$0xff]  ;;  %v1902_v3 = vld [vmem:[#allocation2 + $0x50] sm:$0xff] }
 0x310   : > { %v1903_v34 = vld [vmem:[#allocation2 + $0x68] sm:$0xff]  ;;  %v1904_v39 = vld [vmem:[#allocation2 + $0x30] sm:$0xff]  ;;  %v1906_v44 = vld [vmem:[#allocation2 + $0x80] sm:$0xff] }
 0x311   : > { %v1936_v14 = vadd.f32 %v3762_v1, %v1898_v29  ;;  %v1937_v38 = vadd.f32 %v3764_v47, %v1899_v51  ;;  %v1938_v25 = vadd.f32 %v3762_v1, %v1900_v12  ;;  %v1939_v35 = vadd.f32 %v3764_v47, %v1901_v50  ;;  %v1905_v19 = vld [vmem:[#allocation2 + $0x48] sm:$0xff]  ;;  %v1909_v37 = vld [vmem:[#allocation2 + $0xb8] sm:$0xff]  ;;  %v1910_v57 = vld [vmem:[#allocation2 + $0x60] sm:$0xff] }
 0x312   : > { %v1940_v56 = vadd.f32 %v3762_v1, %v1902_v3  ;;  %v1941_v17 = vadd.f32 %v3764_v47, %v1903_v34  ;;  %v1942_v31 = vadd.f32 %v3762_v1, %v1904_v39  ;;  %v1907_v13 = vld [vmem:[#allocation2 + $0x88] sm:$0xff]  ;;  %v1943_v61 = vadd.f32 %v3764_v47, %v1905_v19  ;;  %v1911_v23 = vld [vmem:[#allocation2 + $0xf0] sm:$0xff]  ;;  %v1913_v27 = vld [vmem:[#allocation2 + $0x78] sm:$0xff] }
 0x313   : > { %1968 = vst [vmem:[#allocation11] sm:$0xff] %v1936_v14  ;;  %v1908_v62 = vld [vmem:[#allocation2 + $0xe8] sm:$0xff]  ;;  %v1944_v16 = vadd.f32 %v3762_v1, %v1906_v44  ;;  %v1945_v2 = vadd.f32 %v3764_v47, %v1907_v13  ;;  %v1947_v53 = vadd.f32 %v3764_v47, %v1909_v37  ;;  %v1948_v52 = vadd.f32 %v3762_v1, %v1910_v57  ;;  %v1914_v54 = vld [vmem:[#allocation2 + $0x38] sm:$0xff]  ;;  %v1916_v26 = vld [vmem:[#allocation2 + $0x40] sm:$0xff] }
 0x314   : > { %1969 = vst [vmem:[#allocation11 + $0x8] sm:$0xff] %v1937_v38  ;;  %v1946_v36 = vadd.f32 %v3762_v1, %v1908_v62  ;;  %v1912_v32 = vld [vmem:[#allocation2 + $0x8] sm:$0xff]  ;;  %v1949_v0 = vadd.f32 %v3764_v47, %v1911_v23  ;;  %v1915_v46 = vld [vmem:[#allocation2 + $0x58] sm:$0xff]  ;;  %v1951_v5 = vadd.f32 %v3764_v47, %v1913_v27  ;;  %v1952_v28 = vadd.f32 %v3762_v1, %v1914_v54  ;;  %v1918_v41 = vld [vmem:[#allocation2 + $0xe0] sm:$0xff] }
 0x315   : > { %1970 = vst [vmem:[#allocation11 + $0x10] sm:$0xff] %v1938_v25  ;;  %v1950_v45 = vadd.f32 %v3762_v1, %v1912_v32  ;;  %v1917_v30 = vld [vmem:[#allocation2 + $0xc8] sm:$0xff]  ;;  %v1953_v18 = vadd.f32 %v3764_v47, %v1915_v46  ;;  %v1954_v55 = vadd.f32 %v3762_v1, %v1916_v26  ;;  %v1919_v24 = vld [vmem:[#allocation2 + $0x90] sm:$0xff]  ;;  %v1956_v58 = vadd.f32 %v3762_v1, %v1918_v41  ;;  %v1921_v21 = vld [vmem:[#allocation2 + $0xc0] sm:$0xff] }
 0x316   : > { %1971 = vst [vmem:[#allocation11 + $0x18] sm:$0xff] %v1939_v35  ;;  %v1955_v63 = vadd.f32 %v3764_v47, %v1917_v30  ;;  %v1920_v60 = vld [vmem:[#allocation2 + $0x70] sm:$0xff]  ;;  %v1957_v59 = vadd.f32 %v3764_v47, %v1919_v24  ;;  %v1922_v11 = vld [vmem:[#allocation2 + $0xa8] sm:$0xff]  ;;  %v1959_v22 = vadd.f32 %v3764_v47, %v1921_v21  ;;  %v1926_v42 = vld [vmem:[#allocation2 + $0xa0] sm:$0xff] }
 0x317   : > { %1972 = vst [vmem:[#allocation11 + $0x20] sm:$0xff] %v1940_v56  ;;  %v1958_v15 = vadd.f32 %v3762_v1, %v1920_v60  ;;  %v1923_v40 = vld [vmem:[#allocation2 + $0xd0] sm:$0xff]  ;;  %v1960_v33 = vadd.f32 %v3762_v1, %v1922_v11  ;;  %v1925_v9 = vld [vmem:[#allocation2 + $0x28] sm:$0xff]  ;;  %v1927_v10 = vld [vmem:[#allocation2 + $0xf8] sm:$0xff]  ;;  %v1964_v20 = vadd.f32 %v3762_v1, %v1926_v42 }
 0x318   : > { %1973 = vst [vmem:[#allocation11 + $0x28] sm:$0xff] %v1941_v17  ;;  %v1924_v43 = vld [vmem:[#allocation2 + $0x10] sm:$0xff]  ;;  %v1961_v6 = vadd.f32 %v3764_v47, %v1923_v40  ;;  %v1963_v4 = vadd.f32 %v3764_v47, %v1925_v9  ;;  %v1928_v48 = vld [vmem:[#allocation2 + $0x20] sm:$0xff]  ;;  %v1929_v49 = vld [vmem:[#allocation2 + $0x98] sm:$0xff]  ;;  %v1965_v29 = vadd.f32 %v3764_v47, %v1927_v10 }
 0x319   : > { %1974 = vst [vmem:[#allocation11 + $0x30] sm:$0xff] %v1942_v31  ;;  %v1962_v8 = vadd.f32 %v3762_v1, %v1924_v43  ;;  %v1966_v7 = vadd.f32 %v3762_v1, %v1928_v48  ;;  %v1967_v51 = vadd.f32 %v3764_v47, %v1929_v49 }
 0x31a   : > { %1975 = vst [vmem:[#allocation11 + $0x38] sm:$0xff] %v1943_v61 }
 0x31b   : > { %1976 = vst [vmem:[#allocation11 + $0x40] sm:$0xff] %v1944_v16 }
 0x31c   : > { %1977 = vst [vmem:[#allocation11 + $0x48] sm:$0xff] %v1945_v2 }
 0x31d   : > { %1978 = vst [vmem:[#allocation11 + $0x50] sm:$0xff] %v1946_v36 }
 0x31e   : > { %1979 = vst [vmem:[#allocation11 + $0x58] sm:$0xff] %v1947_v53 }
 0x31f   : > { %1980 = vst [vmem:[#allocation11 + $0x60] sm:$0xff] %v1948_v52 }
 0x320   : > { %1981 = vst [vmem:[#allocation11 + $0x68] sm:$0xff] %v1949_v0 }
 0x321   : > { %1982 = vst [vmem:[#allocation11 + $0x70] sm:$0xff] %v1950_v45 }
 0x322   : > { %1983 = vst [vmem:[#allocation11 + $0x78] sm:$0xff] %v1951_v5 }
 0x323   : > { %1984 = vst [vmem:[#allocation11 + $0x80] sm:$0xff] %v1952_v28 }
 0x324   : > { %1985 = vst [vmem:[#allocation11 + $0x88] sm:$0xff] %v1953_v18 }
 0x325   : > { %1986 = vst [vmem:[#allocation11 + $0x90] sm:$0xff] %v1954_v55 }
 0x326   : > { %1987 = vst [vmem:[#allocation11 + $0x98] sm:$0xff] %v1955_v63 }
 0x327   : > { %1988 = vst [vmem:[#allocation11 + $0xa0] sm:$0xff] %v1956_v58 }
 0x328   : > { %1989 = vst [vmem:[#allocation11 + $0xa8] sm:$0xff] %v1957_v59 }
 0x329   : > { %1990 = vst [vmem:[#allocation11 + $0xb0] sm:$0xff] %v1958_v15 }
 0x32a   : > { %1991 = vst [vmem:[#allocation11 + $0xb8] sm:$0xff] %v1959_v22 }
 0x32b   : > { %1992 = vst [vmem:[#allocation11 + $0xc0] sm:$0xff] %v1960_v33 }
 0x32c   : > { %1993 = vst [vmem:[#allocation11 + $0xc8] sm:$0xff] %v1961_v6 }
 0x32d   : > { %1994 = vst [vmem:[#allocation11 + $0xd0] sm:$0xff] %v1962_v8 }
 0x32e   : > { %1995 = vst [vmem:[#allocation11 + $0xd8] sm:$0xff] %v1963_v4 }
 0x32f   : > { %1996 = vst [vmem:[#allocation11 + $0xe0] sm:$0xff] %v1964_v20 }
 0x330   : > { %1997 = vst [vmem:[#allocation11 + $0xe8] sm:$0xff] %v1965_v29 }
 0x331   : > { %1998 = vst [vmem:[#allocation11 + $0xf0] sm:$0xff] %v1966_v7 }
 0x332   : > { %1999 = vst [vmem:[#allocation11 + $0xf8] sm:$0xff] %v1967_v51 }
 0x333 PF: > { %p2191_p3 = scmp.eq.s32.totalorder %s2575_s27, 1  ;;  %s2011_s9 = sshll.u32 %s3825_s5, 4  ;;  %s2012_s9 = int_to_ptr.hbm [resolvable:$true] %s2011_s9 }
 0x334   : > { %s2470_s10 = smov [#allocation11]   ;;  %s2471_s17 = smov 256  }
 0x335   : > { %s2009_s11 = sshll.u32 %s2470_s10, 4  ;;  %s2472_s25 = smov 16   ;;  %s2010_s11 = int_to_ptr.vmem [resolvable:$true] %s2009_s11 }
 0x336   : > { %2171 = dma.vmem_to_hbm [thread:$0]  (%p2191_p3), %s2010_s11, 4096, %s2012_s9, [#allocation5], %s2471_s17, %s2471_s17, %s2472_s25  }
 0x337   : > { %2436 = dma.done.wait (%p2191_p3), [#allocation5], 4096  }
 0x338   : > { %2438 = vsyncadd (%p2191_p3), [#allocation5], 4294963200 }
 0x339 PF: > { %s4035_s28 = sld [smem:[#allocation17_spill]]  ;;  %s4039_s18 = smov %s2445_s19 }
 0x33a   : > { %s4036_s30 = sld [smem:[#allocation16_spill]]  ;;  %s4041_s21 = smov %s2457_s22 }
 0x33b   : > { %s4037_s20 = sld [smem:[#allocation19_spill]] }
 0x33c   : > { %s4038_s27 = sld [smem:[#allocation18_spill]] }
 0x33f   : > { %s23_s23 = sadd.s32 1, %s4035_s28  }
 0x340   : > { %p20_p4 = scmp.ge.s32.totalorder %s23_s23, 4   ;;  %s4040_s19 = smov %s4036_s30 }
 0x342   : > { %s4042_s22 = smov %s4038_s27  ;;  %22 = sbr.rel (!%p20_p4) target bundleno = 11 (0xb), region = 116 }
 0x347   :  { %2028 = vsyncpa [#allocation4], 1 }
 0x348   :  { %2030 = vsyncpa [#allocation4 + $0x1], 1 }
 0x349   :  { %2031 = vsyncpa [#allocation7], 1 }
 0x34a   :  { %2033 = vsyncpa [#allocation7 + $0x1], 1 }
 0x34b   :  { %2034 = vsyncpa [#allocation10], 1 }
 0x34c   :  { %2036 = vsyncpa [#allocation10 + $0x1], 1 }
 0x34d   :  { %2037 = vsyncpa [#allocation5], 1 }
 0x34e   :  { %2039 = vsyncpa [#allocation5 + $0x1], 1 }

</bundles_post_ra>
